<compile_context>
chip_gen: v7x
topology: tpu7x:2x2x1
jax: 0.10.0
libtpu: 0.0.40
codegen_flags: <defaults>
</compile_context>

<pallas_src>
import functools

import jax
import jax.numpy as jnp
from jax.experimental import pallas as pl
from jax.experimental.pallas import tpu as pltpu

HIDDEN = 128   # fixed by the PyTorch module (nn.Linear(state_dim, 128))
LANES = 128    # fc3 output padded to a full lane width for dense (unmasked) stores


def _round_up(x, m):
    return ((x + m - 1) // m) * m


# ----------------------------------------------------------------------------
# Trace-time hardware queries (static per process).
# ----------------------------------------------------------------------------
@functools.lru_cache(maxsize=None)
def _device_kind():
    try:
        return jax.devices()[0].device_kind.lower()
    except Exception:
        return ""


def _target_grid_steps():
    # v7x has 2 TensorCores per chip; dimension_semantics=("parallel",) only shards
    # across them when the grid has >= 2 steps.  v5e/v6e are single-TC: one big tile.
    kind = _device_kind()
    return 2 if ("v7" in kind or "7x" in kind) else 1


def _row_cap():
    # Per-row VMEM cost ~ double-buffered x tile + 128-lane f32 out tile (~1.06 KB/row).
    # Keep tiles under the default scoped-VMEM limit (16 MiB v5e, 32 MiB v6e/v7x).
    kind = _device_kind()
    return 12288 if "v5" in kind else 24576


def _tanh_dtype():
    # v6e/v7x have a bf16 EUP (tanh/exp); older chips do not -> keep f32 there.
    kind = _device_kind()
    if "v6" in kind or "v7" in kind or "7x" in kind:
        return jnp.bfloat16
    return jnp.float32


# ----------------------------------------------------------------------------
# Kernel
# ----------------------------------------------------------------------------
def policy_net_kernel(x_ref, w1_ref, b1_ref, w2_ref, b2_ref, w3_ref, b3_ref,
                      out_ref, *, tanh_dtype):
    # fc1 + tanh.  MXU operands in bf16, accumulation in f32.
    x = x_ref[...].astype(jnp.bfloat16)                                 # (TB, S)
    h1 = jnp.dot(x, w1_ref[...], preferred_element_type=jnp.float32)    # (TB, 128)
    h1 = jnp.tanh((h1 + b1_ref[...]).astype(tanh_dtype)).astype(jnp.bfloat16)

    # fc2 + tanh
    h2 = jnp.dot(h1, w2_ref[...], preferred_element_type=jnp.float32)   # (TB, 128)
    h2 = jnp.tanh((h2 + b2_ref[...]).astype(tanh_dtype)).astype(jnp.bfloat16)

    # fc3, padded to LANES columns.  Padded bias entries are -1e30 so padded logits
    # get exactly-zero softmax mass while the store stays lane-dense.
    logits = jnp.dot(h2, w3_ref[...], preferred_element_type=jnp.float32)  # (TB, LANES)
    logits = logits + b3_ref[...]

    # Numerically-stable softmax with an exact divide (rows sum to 1 at f32 precision).
    m = jnp.max(logits, axis=-1, keepdims=True)
    e = jnp.exp(logits - m)
    denom = jnp.sum(e, axis=-1, keepdims=True)
    out_ref[...] = (e / denom).astype(out_ref.dtype)


# ----------------------------------------------------------------------------
# Params
# ----------------------------------------------------------------------------
def init_params(key, state_dim, action_dim, hidden=HIDDEN):
    """Deterministic init mimicking nn.Linear's U(-1/sqrt(fan_in), 1/sqrt(fan_in)).
    Weights are stored (in, out), i.e. the transpose of torch's nn.Linear.weight."""
    ks = jax.random.split(key, 6)

    def lin(kw, kb, fan_in, fan_out):
        bound = 1.0 / jnp.sqrt(fan_in)
        w = jax.random.uniform(kw, (fan_in, fan_out), jnp.float32, -bound, bound)
        b = jax.random.uniform(kb, (1, fan_out), jnp.float32, -bound, bound)
        return w, b

    w1, b1 = lin(ks[0], ks[1], state_dim, hidden)
    w2, b2 = lin(ks[2], ks[3], hidden, hidden)
    w3, b3 = lin(ks[4], ks[5], hidden, action_dim)
    return (w1, b1, w2, b2, w3, b3)


def prepare_params(params):
    """One-time preprocessing (hoisted out of the per-call forward):
    bf16 casts for the MXU and fc3 lane-padding for dense 128-wide stores."""
    w1, b1, w2, b2, w3, b3 = params
    hidden, action_dim = w3.shape
    bf16 = jnp.bfloat16
    w1b = w1.astype(bf16)
    w2b = w2.astype(bf16)
    w3p = jnp.zeros((hidden, LANES), bf16).at[:, :action_dim].set(w3.astype(bf16))
    b3p = jnp.full((1, LANES), -1e30, jnp.float32).at[:, :action_dim].set(
        b3.reshape(1, -1))
    return (w1b, b1.reshape(1, -1), w2b, b2.reshape(1, -1), w3p, b3p)


def _reference_forward(x, params):
    """Plain-JAX/XLA f32 path (used for correctness checks)."""
    w1, b1, w2, b2, w3, b3 = params
    h = jnp.tanh(x @ w1 + b1)
    h = jnp.tanh(h @ w2 + b2)
    return jax.nn.softmax(h @ w3 + b3, axis=-1)


# ----------------------------------------------------------------------------
# Forward
# ----------------------------------------------------------------------------
@functools.partial(
    jax.jit,
    static_argnames=("action_dim", "block_b", "min_pallas_batch", "out_dtype"))
def policy_network_forward(x, prepared, *, action_dim, block_b=None,
                           min_pallas_batch=256, out_dtype=jnp.float32):
    """x: (batch, state_dim) f32 -> (batch, action_dim) softmax probabilities.

    `prepared` is the output of prepare_params() (bf16 weights, lane-padded fc3).
    For batch < min_pallas_batch the plain-XLA path is used (at tiny batches the
    pallas_call / DMA launch overhead dominates and the kernel adds nothing).
    """
    w1b, b1, w2b, b2, w3p, b3p = prepared
    batch, state_dim = x.shape

    if batch < min_pallas_batch:
        h = jnp.tanh(x @ w1b.astype(jnp.float32) + b1)
        h = jnp.tanh(h @ w2b.astype(jnp.float32) + b2)
        logits = h @ w3p.astype(jnp.float32) + b3p
        return jax.nn.softmax(logits, axis=-1)[:, :action_dim].astype(out_dtype)

    # ---- batch tile / grid selection (per-generation) ----
    steps = _target_grid_steps()
    cap = _row_cap()
    if block_b is not None:
        tb = _round_up(min(block_b, cap), 8)
    else:
        tb = _round_up(max(-(-batch // steps), 8), 8)   # ceil(batch/steps), >=8
        tb = min(tb, cap)
    b_pad = _round_up(batch, tb)
    if b_pad != batch:
        x = jnp.pad(x, ((0, b_pad - batch), (0, 0)))

    grid = (b_pad // tb,)
    const = lambda i: (0, 0)   # weight/bias blocks stay resident across grid steps

    out_bytes = jnp.dtype(out_dtype).itemsize
    weight_bytes = sum(int(a.size) * a.dtype.itemsize for a in prepared)
    cost = pl.CostEstimate(
        flops=2 * b_pad * (state_dim * HIDDEN + HIDDEN * HIDDEN + HIDDEN * LANES),
        transcendentals=b_pad * (2 * HIDDEN + LANES),
        bytes_accessed=(b_pad * state_dim * 4 + weight_bytes
                        + b_pad * LANES * out_bytes),
    )

    kernel = functools.partial(policy_net_kernel, tanh_dtype=_tanh_dtype())

    probs_pad = pl.pallas_call(
        kernel,
        out_shape=jax.ShapeDtypeStruct((b_pad, LANES), out_dtype),
        grid=grid,
        in_specs=[
            pl.BlockSpec((tb, state_dim), lambda i: (i, 0)),   # x (batch-tiled)
            pl.BlockSpec((state_dim, HIDDEN), const),          # W1 (bf16)
            pl.BlockSpec((1, HIDDEN), const),                  # b1
            pl.BlockSpec((HIDDEN, HIDDEN), const),             # W2 (bf16)
            pl.BlockSpec((1, HIDDEN), const),                  # b2
            pl.BlockSpec((HIDDEN, LANES), const),              # W3 (bf16, lane-padded)
            pl.BlockSpec((1, LANES), const),                   # b3 (lane-padded, -1e30)
        ],
        out_specs=pl.BlockSpec((tb, LANES), lambda i: (i, 0)),
        compiler_params=pltpu.CompilerParams(
            dimension_semantics=("parallel",)),
        cost_estimate=cost,
    )(x, w1b, b1, w2b, b2, w3p, b3p)

    # Slice back to the real batch / action dims (cheap XLA slice in the wrapper).
    return probs_pad[:batch, :action_dim]


class PolicyNetwork:
    """Lightweight JAX mirror of the PyTorch module; caches prepared params."""

    def __init__(self, state_dim, action_dim, key):
        self.state_dim = state_dim
        self.action_dim = action_dim
        self.params = init_params(key, state_dim, action_dim)
        self.prepared = prepare_params(self.params)   # one-time bf16 cast + lane-pad

    def __call__(self, x, **kwargs):
        return policy_network_forward(x, self.prepared,
                                      action_dim=self.action_dim, **kwargs)


if __name__ == "__main__":
    # CartPole-like dims: state_dim=4, action_dim=2; a small PPO rollout batch of 512
    # (one grid step on v5e/v6e, two parallel steps on v7x).
    batch, state_dim, action_dim = 512, 4, 2

    key = jax.random.PRNGKey(0)
    k_x, k_p = jax.random.split(key)
    x = jax.random.normal(k_x, (batch, state_dim), dtype=jnp.float32)

    net = PolicyNetwork(state_dim, action_dim, k_p)
    probs = jax.block_until_ready(net(x))

    # Reference check in plain f32 JAX.  Tolerances account for bf16 MXU operands.
    ref = _reference_forward(x, net.params)

    assert probs.shape == (batch, action_dim)
    assert bool(jnp.all(jnp.isfinite(probs)))
    assert jnp.allclose(probs, ref, atol=2e-2, rtol=2e-2)
    assert jnp.allclose(jnp.sum(probs, axis=-1), 1.0, atol=1e-3)

    print("KERNEL_OK")
</pallas_src>

<mosaic_0001>
module attributes {stable_mosaic.version = 11 : i64} {
  func.func @policy_net_kernel(%arg0: i32, %arg1: memref<512x4xf32, #tpu.memory_space<vmem>>, %arg2: memref<4x128xbf16, #tpu.memory_space<vmem>>, %arg3: memref<1x128xf32, #tpu.memory_space<vmem>>, %arg4: memref<128x128xbf16, #tpu.memory_space<vmem>>, %arg5: memref<1x128xf32, #tpu.memory_space<vmem>>, %arg6: memref<128x128xbf16, #tpu.memory_space<vmem>>, %arg7: memref<1x128xf32, #tpu.memory_space<vmem>>, %arg8: memref<512x128xf32, #tpu.memory_space<vmem>>) attributes {dimension_semantics = [#tpu.dimension_semantics<parallel>], iteration_bounds = array<i64: 1>, scalar_prefetch = 0 : i64, scratch_operands = 0 : i64, tpu.core_type = #tpu.core_type<tc>, window_params = [{transform_indices = @transform_0, window_bounds = array<i64: 512, 4>}, {pipeline_mode = #tpu.pipeline_mode<synchronous>, transform_indices = @transform_1, window_bounds = array<i64: 4, 128>}, {pipeline_mode = #tpu.pipeline_mode<synchronous>, transform_indices = @transform_2, window_bounds = array<i64: 1, 128>}, {pipeline_mode = #tpu.pipeline_mode<synchronous>, transform_indices = @transform_3, window_bounds = array<i64: 128, 128>}, {pipeline_mode = #tpu.pipeline_mode<synchronous>, transform_indices = @transform_4, window_bounds = array<i64: 1, 128>}, {pipeline_mode = #tpu.pipeline_mode<synchronous>, transform_indices = @transform_5, window_bounds = array<i64: 128, 128>}, {pipeline_mode = #tpu.pipeline_mode<synchronous>, transform_indices = @transform_6, window_bounds = array<i64: 1, 128>}, {transform_indices = @transform_7, window_bounds = array<i64: 512, 128>}]} {
    %c0 = arith.constant 0 : index
    %c0_0 = arith.constant 0 : index
    %0 = vector.load %arg1[%c0, %c0_0] : memref<512x4xf32, #tpu.memory_space<vmem>>, vector<512x4xf32>
    %1 = arith.truncf %0 : vector<512x4xf32> to vector<512x4xbf16>
    %c0_1 = arith.constant 0 : index
    %c0_2 = arith.constant 0 : index
    %2 = vector.load %arg2[%c0_1, %c0_2] : memref<4x128xbf16, #tpu.memory_space<vmem>>, vector<4x128xbf16>
    %cst = arith.constant dense<0.000000e+00> : vector<512x128xf32>
    %3 = tpu.matmul %1, %2, %cst {dimension_numbers = #tpu.dot_dimension_numbers<[1], [0], [0], [1], [0, 0, 1, 1], [], []>} : vector<512x4xbf16>, vector<4x128xbf16>, vector<512x128xf32> -> vector<512x128xf32>
    %c0_3 = arith.constant 0 : index
    %c0_4 = arith.constant 0 : index
    %4 = vector.load %arg3[%c0_3, %c0_4] : memref<1x128xf32, #tpu.memory_space<vmem>>, vector<1x128xf32>
    %5 = vector.broadcast %4 : vector<1x128xf32> to vector<512x128xf32>
    %6 = arith.addf %3, %5 : vector<512x128xf32>
    %7 = math.tanh %6 : vector<512x128xf32>
    %8 = arith.truncf %7 : vector<512x128xf32> to vector<512x128xbf16>
    %c0_5 = arith.constant 0 : index
    %c0_6 = arith.constant 0 : index
    %9 = vector.load %arg4[%c0_5, %c0_6] : memref<128x128xbf16, #tpu.memory_space<vmem>>, vector<128x128xbf16>
    %cst_7 = arith.constant dense<0.000000e+00> : vector<512x128xf32>
    %10 = tpu.matmul %8, %9, %cst_7 {dimension_numbers = #tpu.dot_dimension_numbers<[1], [0], [0], [1], [0, 0, 1, 1], [], []>} : vector<512x128xbf16>, vector<128x128xbf16>, vector<512x128xf32> -> vector<512x128xf32>
    %c0_8 = arith.constant 0 : index
    %c0_9 = arith.constant 0 : index
    %11 = vector.load %arg5[%c0_8, %c0_9] : memref<1x128xf32, #tpu.memory_space<vmem>>, vector<1x128xf32>
    %12 = vector.broadcast %11 : vector<1x128xf32> to vector<512x128xf32>
    %13 = arith.addf %10, %12 : vector<512x128xf32>
    %14 = math.tanh %13 : vector<512x128xf32>
    %15 = arith.truncf %14 : vector<512x128xf32> to vector<512x128xbf16>
    %c0_10 = arith.constant 0 : index
    %c0_11 = arith.constant 0 : index
    %16 = vector.load %arg6[%c0_10, %c0_11] : memref<128x128xbf16, #tpu.memory_space<vmem>>, vector<128x128xbf16>
    %cst_12 = arith.constant dense<0.000000e+00> : vector<512x128xf32>
    %17 = tpu.matmul %15, %16, %cst_12 {dimension_numbers = #tpu.dot_dimension_numbers<[1], [0], [0], [1], [0, 0, 1, 1], [], []>} : vector<512x128xbf16>, vector<128x128xbf16>, vector<512x128xf32> -> vector<512x128xf32>
    %c0_13 = arith.constant 0 : index
    %c0_14 = arith.constant 0 : index
    %18 = vector.load %arg7[%c0_13, %c0_14] : memref<1x128xf32, #tpu.memory_space<vmem>>, vector<1x128xf32>
    %19 = vector.broadcast %18 : vector<1x128xf32> to vector<512x128xf32>
    %20 = arith.addf %17, %19 : vector<512x128xf32>
    %cst_15 = arith.constant dense<0xFF800000> : vector<512xf32>
    %21 = vector.multi_reduction <maximumf>, %20, %cst_15 [1] : vector<512x128xf32> to vector<512xf32>
    %22 = vector.shape_cast %21 : vector<512xf32> to vector<512x1xf32>
    %23 = vector.broadcast %22 : vector<512x1xf32> to vector<512x128xf32>
    %24 = arith.subf %20, %23 : vector<512x128xf32>
    %25 = math.exp %24 : vector<512x128xf32>
    %cst_16 = arith.constant dense<0.000000e+00> : vector<512xf32>
    %26 = vector.multi_reduction <add>, %25, %cst_16 [1] : vector<512x128xf32> to vector<512xf32>
    %27 = vector.shape_cast %26 : vector<512xf32> to vector<512x1xf32>
    %28 = vector.broadcast %27 : vector<512x1xf32> to vector<512x128xf32>
    %29 = arith.divf %25, %28 : vector<512x128xf32>
    %c0_17 = arith.constant 0 : index
    %c0_18 = arith.constant 0 : index
    %30 = vector.load %arg8[%c0_17, %c0_18] : memref<512x128xf32, #tpu.memory_space<vmem>>, vector<512x128xf32>
    tpu.vector_store %arg8[%c0_17, %c0_18], %29 {strides = array<i32>} : memref<512x128xf32, #tpu.memory_space<vmem>>, vector<512x128xf32>,
    return
  }
  func.func @transform_0(%arg0: i32) -> (i32, i32) {
    %c0_i32 = arith.constant 0 : i32
    %c0_i32_0 = arith.constant 0 : i32
    return %arg0, %c0_i32 : i32, i32
  }
  func.func @transform_1(%arg0: i32) -> (i32, i32) {
    %c0_i32 = arith.constant 0 : i32
    %c0_i32_0 = arith.constant 0 : i32
    %c0_i32_1 = arith.constant 0 : i32
    return %c0_i32, %c0_i32_0 : i32, i32
  }
  func.func @transform_2(%arg0: i32) -> (i32, i32) {
    %c0_i32 = arith.constant 0 : i32
    %c0_i32_0 = arith.constant 0 : i32
    %c0_i32_1 = arith.constant 0 : i32
    return %c0_i32, %c0_i32_0 : i32, i32
  }
  func.func @transform_3(%arg0: i32) -> (i32, i32) {
    %c0_i32 = arith.constant 0 : i32
    %c0_i32_0 = arith.constant 0 : i32
    %c0_i32_1 = arith.constant 0 : i32
    return %c0_i32, %c0_i32_0 : i32, i32
  }
  func.func @transform_4(%arg0: i32) -> (i32, i32) {
    %c0_i32 = arith.constant 0 : i32
    %c0_i32_0 = arith.constant 0 : i32
    %c0_i32_1 = arith.constant 0 : i32
    return %c0_i32, %c0_i32_0 : i32, i32
  }
  func.func @transform_5(%arg0: i32) -> (i32, i32) {
    %c0_i32 = arith.constant 0 : i32
    %c0_i32_0 = arith.constant 0 : i32
    %c0_i32_1 = arith.constant 0 : i32
    return %c0_i32, %c0_i32_0 : i32, i32
  }
  func.func @transform_6(%arg0: i32) -> (i32, i32) {
    %c0_i32 = arith.constant 0 : i32
    %c0_i32_0 = arith.constant 0 : i32
    %c0_i32_1 = arith.constant 0 : i32
    return %c0_i32, %c0_i32_0 : i32, i32
  }
  func.func @transform_7(%arg0: i32) -> (i32, i32) {
    %c0_i32 = arith.constant 0 : i32
    %c0_i32_0 = arith.constant 0 : i32
    return %arg0, %c0_i32 : i32, i32
  }
}

</mosaic_0001>

<bundles_post_ra>
// kernel: policy_network_forward.1
= control target key start
LH: loop header
LB: loop body
LE: loop exit
PB: predicated region body
PF: predicated region fallthrough
CT: control target
= control target key end

     0   :  { %vm228_vm0 = vcmask 1041408   ;;  %vm131_vm1 = vcmask 31744   ;;  %s4312_s1 = inlined_call_operand.vmem [shape: bf16[4,128], index: 1, kind: input, shape index: {}]   ;;  %s4313_s0 = inlined_call_operand.vmem [shape: f32[512,4], index: 0, kind: input, shape index: {}]   ;;  %s4314_s3 = inlined_call_operand.vmem [shape: bf16[128,128], index: 3, kind: input, shape index: {}]   ;;  %s4315_s2 = inlined_call_operand.vmem [shape: f32[1,128], index: 2, kind: input, shape index: {}]   ;;  %s4316_s5 = inlined_call_operand.vmem [shape: bf16[128,128], index: 5, kind: input, shape index: {}]   ;;  %s4317_s4 = inlined_call_operand.vmem [shape: f32[1,128], index: 4, kind: input, shape index: {}]   ;;  %s4318_s6 = inlined_call_operand.vmem [shape: f32[1,128], index: 6, kind: input, shape index: {}]   ;;  %s4319_s7 = inlined_call_operand.vmem [shape: f32[512,128], index: 7, kind: output, shape index: {}]  }
   0x1   :  { %v123_v0 = vld [vmem:[%s4312_s1] sm:$0x3]  ;;  %v28_v2 = vld [vmem:[%s4313_s0 + $0x8] sm:$0xff]  ;;  %v29_v5 = vld [vmem:[%s4313_s0 + $0x10] sm:$0xff] }
   0x2   :  { %v27_v1 = vld [vmem:[%s4313_s0] sm:$0xff]  ;;  %2469 = vmatprep.subr.msk.bf16.mxu0 %vm228_vm0, %v123_v0  ;;  %v230_v3 = vsel %vm228_vm0, %v123_v0, 0  ;;  %v30_v6 = vld [vmem:[%s4313_s0 + $0x18] sm:$0xff]  ;;  %2470 = vmatprep.subr.msk.bf16.mxu1 %vm228_vm0, %v123_v0  ;;  %v32_v9 = vld [vmem:[%s4313_s0 + $0x28] sm:$0xff] }
   0x3   :  { %v91_v4 = vpack.c.bf16 %v28_v2, %v27_v1  ;;  %v31_v7 = vld [vmem:[%s4313_s0 + $0x20] sm:$0xff]  ;;  %2242 = vmatpush3.bf16.msra.mxu0 %v230_v3  ;;  %v92_v8 = vpack.c.bf16 %v30_v6, %v29_v5  ;;  %2468 = vmatpush3.bf16.msra.mxu1 %v230_v3  ;;  %v33_v11 = vld [vmem:[%s4313_s0 + $0x30] sm:$0xff]  ;;  %v34_v12 = vld [vmem:[%s4313_s0 + $0x38] sm:$0xff] }
   0x4   :  { %v93_v10 = vpack.c.bf16 %v32_v9, %v31_v7  ;;  %v35_v13 = vld [vmem:[%s4313_s0 + $0x40] sm:$0xff]  ;;  %v36_v14 = vld [vmem:[%s4313_s0 + $0x48] sm:$0xff]  ;;  %v94_v15 = vpack.c.bf16 %v34_v12, %v33_v11  ;;  %v61_v19 = vld [vmem:[%s4313_s0 + $0x110] sm:$0xff] }
   0x5   :  { %2243 = vmatprep.mubr.msk.bf16.mxu0 %vm131_vm1, %v91_v4  ;;  %v95_v16 = vpack.c.bf16 %v36_v14, %v35_v13  ;;  %v59_v17 = vld [vmem:[%s4313_s0 + $0x100] sm:$0xff]  ;;  %v60_v18 = vld [vmem:[%s4313_s0 + $0x108] sm:$0xff]  ;;  %v62_v21 = vld [vmem:[%s4313_s0 + $0x118] sm:$0xff] }
   0x6   :  { %2244 = vmatmul.mubr.msk.bf16.vlgmr.msra.gmra.mrb[0].mxu0 %vm131_vm1, %v92_v8  ;;  %v107_v20 = vpack.c.bf16 %v60_v18, %v59_v17  ;;  %v63_v22 = vld [vmem:[%s4313_s0 + $0x120] sm:$0xff]  ;;  %v64_v23 = vld [vmem:[%s4313_s0 + $0x128] sm:$0xff]  ;;  %v108_v24 = vpack.c.bf16 %v62_v21, %v61_v19  ;;  %v37_v26 = vld [vmem:[%s4313_s0 + $0x50] sm:$0xff] }
   0x7   :  { %2247 = vmatprep.mubr.msk.bf16.mxu0 %vm131_vm1, %v93_v10  ;;  %v109_v25 = vpack.c.bf16 %v64_v23, %v63_v22  ;;  %v38_v27 = vld [vmem:[%s4313_s0 + $0x58] sm:$0xff]  ;;  %v39_v28 = vld [vmem:[%s4313_s0 + $0x60] sm:$0xff]  ;;  %v40_v29 = vld [vmem:[%s4313_s0 + $0x68] sm:$0xff] }
   0x8   :  { %2275 = vmatprep.mubr.msk.bf16.mxu1 %vm131_vm1, %v107_v20  ;;  %v65_v30 = vld [vmem:[%s4313_s0 + $0x130] sm:$0xff]  ;;  %v66_v31 = vld [vmem:[%s4313_s0 + $0x138] sm:$0xff]  ;;  %v96_v32 = vpack.c.bf16 %v38_v27, %v37_v26  ;;  %v67_v33 = vld [vmem:[%s4313_s0 + $0x140] sm:$0xff]  ;;  %v97_v35 = vpack.c.bf16 %v40_v29, %v39_v28 }
   0x9   :  { %2276 = vmatmul.mubr.msk.bf16.vlgmr.msra.gmra.mrb[0].mxu1 %vm131_vm1, %v108_v24  ;;  %v68_v34 = vld [vmem:[%s4313_s0 + $0x148] sm:$0xff]  ;;  %v110_v36 = vpack.c.bf16 %v66_v31, %v65_v30  ;;  %v41_v37 = vld [vmem:[%s4313_s0 + $0x70] sm:$0xff]  ;;  %v42_v38 = vld [vmem:[%s4313_s0 + $0x78] sm:$0xff] }
   0xa   :  { %2279 = vmatprep.mubr.msk.bf16.mxu1 %vm131_vm1, %v109_v25  ;;  %v111_v39 = vpack.c.bf16 %v68_v34, %v67_v33  ;;  %v43_v40 = vld [vmem:[%s4313_s0 + $0x80] sm:$0xff]  ;;  %v44_v41 = vld [vmem:[%s4313_s0 + $0x88] sm:$0xff]  ;;  %v69_v42 = vld [vmem:[%s4313_s0 + $0x150] sm:$0xff]  ;;  %v98_v47 = vpack.c.bf16 %v42_v38, %v41_v37 }
   0xb   :  { %v70_v43 = vld [vmem:[%s4313_s0 + $0x158] sm:$0xff]  ;;  %v2471_v44 = vld [vmem:[%s4314_s3] sm:$0xff]   ;;  %v2472_v45 = vld [vmem:[%s4314_s3 + $0x8] sm:$0xff]   ;;  %v99_v49 = vpack.c.bf16 %v44_v41, %v43_v40 }
   0xc   :  { %v71_v46 = vld [vmem:[%s4313_s0 + $0x160] sm:$0xff]  ;;  %2307 = vmatprep.subr.bf16.mxu1 %v2471_v44  ;;  %v72_v48 = vld [vmem:[%s4313_s0 + $0x168] sm:$0xff]  ;;  %v2473_v50 = vld [vmem:[%s4314_s3 + $0x10] sm:$0xff]   ;;  %v112_v51 = vpack.c.bf16 %v70_v43, %v69_v42 }
   0xd   :  { %2308 = vmatpush3.bf16.msra.mxu1 %v2471_v44  ;;  %v113_v52 = vpack.c.bf16 %v72_v48, %v71_v46  ;;  %v45_v53 = vld [vmem:[%s4313_s0 + $0x90] sm:$0xff]  ;;  %v46_v54 = vld [vmem:[%s4313_s0 + $0x98] sm:$0xff]  ;;  %v47_v56 = vld [vmem:[%s4313_s0 + $0xa0] sm:$0xff] }
   0xe   :  { %2248 = vmatmul.mubr.msk.bf16.gmra.mrb[4].mxu0 %vm131_vm1, %v94_v15  ;;  %2309 = vmatprep.subr.bf16.mxu1 %v2472_v45  ;;  %v2474_v55 = vld [vmem:[%s4314_s3 + $0x18] sm:$0xff]   ;;  %v48_v57 = vld [vmem:[%s4313_s0 + $0xa8] sm:$0xff]  ;;  %v73_v58 = vld [vmem:[%s4313_s0 + $0x170] sm:$0xff]  ;;  %v100_v60 = vpack.c.bf16 %v46_v54, %v45_v53 }
   0xf   :  { %2251 = vmatprep.mubr.msk.bf16.mxu0 %vm131_vm1, %v95_v16  ;;  %v74_v59 = vld [vmem:[%s4313_s0 + $0x178] sm:$0xff]  ;;  %v75_v61 = vld [vmem:[%s4313_s0 + $0x180] sm:$0xff]  ;;  %v76_v62 = vld [vmem:[%s4313_s0 + $0x188] sm:$0xff]  ;;  %v101_v63 = vpack.c.bf16 %v48_v57, %v47_v56 }
  0x10   :  { %v2475_v0 = vld [vmem:[%s4314_s3 + $0x20] sm:$0xff]   ;;  %v114_v1 = vpack.c.bf16 %v74_v59, %v73_v58  ;;  %v115_v2 = vpack.c.bf16 %v76_v62, %v75_v61  ;;  %v49_v3 = vld [vmem:[%s4313_s0 + $0xb0] sm:$0xff]  ;;  %v50_v4 = vld [vmem:[%s4313_s0 + $0xb8] sm:$0xff] }
  0x11   :  { %2280 = vmatmul.mubr.msk.bf16.gmra.mrb[4].mxu1 %vm131_vm1, %v110_v36  ;;  %v2476_v5 = vld [vmem:[%s4314_s3 + $0x28] sm:$0xff]   ;;  %v51_v6 = vld [vmem:[%s4313_s0 + $0xc0] sm:$0xff]  ;;  %v77_v8 = vld [vmem:[%s4313_s0 + $0x190] sm:$0xff]  ;;  %v102_v10 = vpack.c.bf16 %v50_v4, %v49_v3 }
  0x12   :  { %2283 = vmatprep.mubr.msk.bf16.mxu1 %vm131_vm1, %v111_v39  ;;  %2310 = vmatpush3.bf16.msra.mxu1 %v2472_v45  ;;  %v52_v7 = vld [vmem:[%s4313_s0 + $0xc8] sm:$0xff]  ;;  %v78_v9 = vld [vmem:[%s4313_s0 + $0x198] sm:$0xff]  ;;  %v79_v11 = vld [vmem:[%s4313_s0 + $0x1a0] sm:$0xff] }
  0x13   :  { %2311 = vmatprep.subr.bf16.mxu1 %v2473_v50  ;;  %v80_v12 = vld [vmem:[%s4313_s0 + $0x1a8] sm:$0xff]  ;;  %v103_v13 = vpack.c.bf16 %v52_v7, %v51_v6  ;;  %v116_v14 = vpack.c.bf16 %v78_v9, %v77_v8  ;;  %v53_v16 = vld [vmem:[%s4313_s0 + $0xd0] sm:$0xff]  ;;  %v54_v17 = vld [vmem:[%s4313_s0 + $0xd8] sm:$0xff] }
  0x14   :  { %v117_v15 = vpack.c.bf16 %v80_v12, %v79_v11  ;;  %v55_v18 = vld [vmem:[%s4313_s0 + $0xe0] sm:$0xff]  ;;  %v56_v19 = vld [vmem:[%s4313_s0 + $0xe8] sm:$0xff]  ;;  %v81_v20 = vld [vmem:[%s4313_s0 + $0x1b0] sm:$0xff]  ;;  %v104_v22 = vpack.c.bf16 %v54_v17, %v53_v16 }
  0x15   :  { %v82_v21 = vld [vmem:[%s4313_s0 + $0x1b8] sm:$0xff]  ;;  %v83_v23 = vld [vmem:[%s4313_s0 + $0x1c0] sm:$0xff]  ;;  %v84_v24 = vld [vmem:[%s4313_s0 + $0x1c8] sm:$0xff]  ;;  %v105_v25 = vpack.c.bf16 %v56_v19, %v55_v18 }
  0x16   :  { %2252 = vmatmul.mubr.msk.bf16.gmra.mrb[8].mxu0 %vm131_vm1, %v96_v32  ;;  %2312 = vmatpush3.bf16.msra.mxu1 %v2473_v50  ;;  %v118_v26 = vpack.c.bf16 %v82_v21, %v81_v20  ;;  %v119_v27 = vpack.c.bf16 %v84_v24, %v83_v23  ;;  %v57_v28 = vld [vmem:[%s4313_s0 + $0xf0] sm:$0xff]  ;;  %v58_v29 = vld [vmem:[%s4313_s0 + $0xf8] sm:$0xff]  ;;  %v87_v33 = vld [vmem:[%s4313_s0 + $0x1e0] sm:$0xff] }
  0x17   :  { %2255 = vmatprep.mubr.msk.bf16.mxu0 %vm131_vm1, %v97_v35  ;;  %2313 = vmatprep.subr.bf16.mxu1 %v2474_v55  ;;  %v85_v30 = vld [vmem:[%s4313_s0 + $0x1d0] sm:$0xff]  ;;  %v86_v31 = vld [vmem:[%s4313_s0 + $0x1d8] sm:$0xff]  ;;  %v106_v32 = vpack.c.bf16 %v58_v29, %v57_v28  ;;  %v88_v34 = vld [vmem:[%s4313_s0 + $0x1e8] sm:$0xff] }
  0x18   :  { %v120_v35 = vpack.c.bf16 %v86_v31, %v85_v30  ;;  %v121_v36 = vpack.c.bf16 %v88_v34, %v87_v33  ;;  %v89_v37 = vld [vmem:[%s4313_s0 + $0x1f0] sm:$0xff]  ;;  %v90_v38 = vld [vmem:[%s4313_s0 + $0x1f8] sm:$0xff]  ;;  %v3293_v42 = vld [vmem:[%s4315_s2] ss:$0 sm:$0xff] }
  0x19   :  { %2284 = vmatmul.mubr.msk.bf16.gmra.mrb[8].mxu1 %vm131_vm1, %v112_v51  ;;  %v122_v39 = vpack.c.bf16 %v90_v38, %v89_v37  ;;  %v2477_v40 = vld [vmem:[%s4314_s3 + $0x30] sm:$0xff]   ;;  %v2478_v41 = vld [vmem:[%s4314_s3 + $0x38] sm:$0xff]   ;;  %v2479_v3 = vld [vmem:[%s4316_s5] sm:$0xff]  }
  0x1a   :  { %2287 = vmatprep.mubr.msk.bf16.mxu1 %vm131_vm1, %v113_v52  ;;  %2314 = vmatpush3.bf16.msra.mxu1 %v2474_v55  ;;  %v2480_v6 = vld [vmem:[%s4316_s5 + $0x8] sm:$0xff]   ;;  %v2482_v28 = vld [vmem:[%s4316_s5 + $0x18] sm:$0xff]  }
  0x1b   :  { %2315 = vmatprep.subr.bf16.mxu1 %v2475_v0  ;;  %2387 = vmatprep.subr.bf16.mxu0 %v2479_v3 }
  0x1c   :  { %2388 = vmatpush3.bf16.msra.mxu0 %v2479_v3 }
  0x1d   :  { %2389 = vmatprep.subr.bf16.mxu0 %v2480_v6 }
  0x1e   :  { %2256 = vmatmul.mubr.msk.bf16.gmra.mrb[12].mxu0 %vm131_vm1, %v98_v47  ;;  %2316 = vmatpush3.bf16.msra.mxu1 %v2475_v0 }
  0x1f   :  { %2259 = vmatprep.mubr.msk.bf16.mxu0 %vm131_vm1, %v99_v49  ;;  %2317 = vmatprep.subr.bf16.mxu1 %v2476_v5 }
  0x20   :  { %2390 = vmatpush3.bf16.msra.mxu0 %v2480_v6 }
  0x21   :  { %2288 = vmatmul.mubr.msk.bf16.gmra.mrb[12].mxu1 %vm131_vm1, %v114_v1 }
  0x22   :  { %2291 = vmatprep.mubr.msk.bf16.mxu1 %vm131_vm1, %v115_v2  ;;  %2318 = vmatpush3.bf16.msra.mxu1 %v2476_v5 }
  0x23   :  { %2319 = vmatprep.subr.bf16.mxu1 %v2477_v40 }
  0x26   :  { %2260 = vmatmul.mubr.msk.bf16.gmra.mrb[16].mxu0 %vm131_vm1, %v100_v60  ;;  %2320 = vmatpush3.bf16.msra.mxu1 %v2477_v40 }
  0x27   :  { %2263 = vmatprep.mubr.msk.bf16.mxu0 %vm131_vm1, %v101_v63  ;;  %2321 = vmatprep.subr.bf16.mxu1 %v2478_v41 }
  0x29   :  { %2292 = vmatmul.mubr.msk.bf16.gmra.mrb[16].mxu1 %vm131_vm1, %v116_v14  ;;  %v2481_v14 = vld [vmem:[%s4316_s5 + $0x10] sm:$0xff]  }
  0x2a   :  { %2295 = vmatprep.mubr.msk.bf16.mxu1 %vm131_vm1, %v117_v15  ;;  %2322 = vmatpush3.bf16.msra.mxu1 %v2478_v41 }
  0x2b   :  { %2391 = vmatprep.subr.bf16.mxu0 %v2481_v14 }
  0x2c   :  { %2392 = vmatpush3.bf16.msra.mxu0 %v2481_v14 }
  0x2d   :  { %2393 = vmatprep.subr.bf16.mxu0 %v2482_v28 }
  0x2e   :  { %2264 = vmatmul.mubr.msk.bf16.gmra.mrb[20].mxu0 %vm131_vm1, %v102_v10 }
  0x2f   :  { %2267 = vmatprep.mubr.msk.bf16.mxu0 %vm131_vm1, %v103_v13 }
  0x30   :  { %2394 = vmatpush3.bf16.msra.mxu0 %v2482_v28 }
  0x31   :  { %2296 = vmatmul.mubr.msk.bf16.gmra.mrb[20].mxu1 %vm131_vm1, %v118_v26 }
  0x32   :  { %2299 = vmatprep.mubr.msk.bf16.mxu1 %vm131_vm1, %v119_v27 }
  0x36   :  { %2268 = vmatmul.mubr.msk.bf16.gmra.mrb[24].mxu0 %vm131_vm1, %v104_v22 }
  0x37   :  { %2271 = vmatprep.mubr.msk.bf16.mxu0 %vm131_vm1, %v105_v25 }
  0x39   :  { %2300 = vmatmul.mubr.msk.bf16.gmra.mrb[24].mxu1 %vm131_vm1, %v120_v35 }
  0x3a   :  { %2303 = vmatprep.mubr.msk.bf16.mxu1 %vm131_vm1, %v121_v36 }
  0x3e   :  { %2272 = vmatmul.mubr.msk.bf16.gmra.mrb[28].mxu0 %vm131_vm1, %v106_v32 }
  0x41   :  { %2304 = vmatmul.mubr.msk.bf16.gmra.mrb[28].mxu1 %vm131_vm1, %v122_v39  ;;  %v2483_v39 = vld [vmem:[%s4316_s5 + $0x20] sm:$0xff]  }
  0x42   :  { %2395 = vmatprep.subr.bf16.mxu0 %v2483_v39 }
  0x43   :  { %2396 = vmatpush3.bf16.msra.mxu0 %v2483_v39 }
  0xd9   :  { %v2245_v43 = vpop.f32.mrb[0].mxu0 }
  0xda   :  { %v275_v44 = vadd.f32 %v2245_v43, %v3293_v42  ;;  %v266_v45 = vpop.f32.mrb[1].mxu0 }
  0xdb   :  { %v267_v46 = vadd.f32 %v3293_v42, %v266_v45  ;;  %v2246_v47 = vpop.f32.mrb[2].mxu0 }
  0xdc   :  { %2487 = vtanh.f32 %v275_v44  ;;  %v278_v48 = vadd.f32 %v2246_v47, %v3293_v42  ;;  %v269_v49 = vpop.f32.mrb[3].mxu0  ;;  %v2277_v56 = vpop.f32.mrb[0].mxu1 }
  0xdd   :  { %2489 = vtanh.f32 %v267_v46  ;;  %v270_v50 = vadd.f32 %v3293_v42, %v269_v49  ;;  %v403_v59 = vadd.f32 %v2277_v56, %v3293_v42  ;;  %v394_v60 = vpop.f32.mrb[1].mxu1 }
  0xde   :  { %2491 = vtanh.f32 %v278_v48  ;;  %v395_v62 = vadd.f32 %v3293_v42, %v394_v60  ;;  %v2278_v63 = vpop.f32.mrb[2].mxu1 }
  0xdf   :  { %2493 = vtanh.f32 %v270_v50  ;;  %v406_v1 = vadd.f32 %v2278_v63, %v3293_v42  ;;  %v397_v2 = vpop.f32.mrb[3].mxu1 }
  0xe0   :  { %v398_v5 = vadd.f32 %v3293_v42, %v397_v2 }
  0xe1   :  { %v2249_v51 = vpop.f32.mrb[4].mxu0 }
  0xe2   :  { %v291_v52 = vadd.f32 %v2249_v51, %v3293_v42  ;;  %v282_v53 = vpop.f32.mrb[5].mxu0 }
  0xe3   :  { %v283_v54 = vadd.f32 %v3293_v42, %v282_v53  ;;  %v2250_v55 = vpop.f32.mrb[6].mxu0 }
  0xe4   :  { %2495 = vtanh.f32 %v291_v52  ;;  %v294_v57 = vadd.f32 %v2250_v55, %v3293_v42  ;;  %v285_v58 = vpop.f32.mrb[7].mxu0  ;;  %v2281_v17 = vpop.f32.mrb[4].mxu1 }
  0xe5   :  { %2497 = vtanh.f32 %v283_v54  ;;  %v286_v61 = vadd.f32 %v3293_v42, %v285_v58  ;;  %v419_v20 = vadd.f32 %v2281_v17, %v3293_v42  ;;  %v410_v21 = vpop.f32.mrb[5].mxu1 }
  0xe6   :  { %v2488_v0 = vpop.eup %2487  ;;  %2499 = vtanh.f32 %v294_v57  ;;  %v411_v23 = vadd.f32 %v3293_v42, %v410_v21  ;;  %v2282_v24 = vpop.f32.mrb[6].mxu1 }
  0xe7   :  { %v2490_v4 = vpop.eup %2489  ;;  %2501 = vtanh.f32 %v286_v61  ;;  %v422_v26 = vadd.f32 %v2282_v24, %v3293_v42  ;;  %v413_v27 = vpop.f32.mrb[7].mxu1 }
  0xe8   :  { %v2492_v7 = vpop.eup %2491  ;;  %2503 = vtanh.f32 %v403_v59  ;;  %v414_v30 = vadd.f32 %v3293_v42, %v413_v27  ;;  %v2484_v59 = vld [vmem:[%s4316_s5 + $0x28] sm:$0xff]  }
  0xe9   :  { %v2494_v8 = vpop.eup %2493  ;;  %v2253_v9 = vpop.f32.mrb[8].mxu0  ;;  %v586_v10 = vpack.c.bf16 %v2492_v7, %v2488_v0  ;;  %2505 = vtanh.f32 %v395_v62  ;;  %2397 = vmatprep.subr.bf16.mxu0 %v2484_v59 }
  0xea   :  { %v307_v11 = vadd.f32 %v2253_v9, %v3293_v42  ;;  %v298_v12 = vpop.f32.mrb[9].mxu0  ;;  %v585_v13 = vpack.c.bf16 %v2494_v8, %v2490_v4  ;;  %2507 = vtanh.f32 %v406_v1  ;;  %2398 = vmatpush3.bf16.msra.mxu0 %v2484_v59 }
  0xeb   :  { %v299_v15 = vadd.f32 %v3293_v42, %v298_v12  ;;  %v2254_v16 = vpop.f32.mrb[10].mxu0  ;;  %2509 = vtanh.f32 %v398_v5 }
  0xec   :  { %2511 = vtanh.f32 %v307_v11  ;;  %v310_v18 = vadd.f32 %v2254_v16, %v3293_v42  ;;  %v301_v19 = vpop.f32.mrb[11].mxu0  ;;  %2323 = vmatprep.mubr.bf16.mxu1 %v585_v13  ;;  %v2285_v44 = vpop.f32.mrb[8].mxu1 }
  0xed   :  { %2513 = vtanh.f32 %v299_v15  ;;  %v302_v22 = vadd.f32 %v3293_v42, %v301_v19  ;;  %2324 = vmatmul.mubr.bf16.vlgmr.msra.gmra.mrb[32].mxu1 %v586_v10  ;;  %v435_v48 = vadd.f32 %v2285_v44, %v3293_v42  ;;  %v426_v49 = vpop.f32.mrb[9].mxu1 }
  0xee   :  { %v2496_v25 = vpop.eup %2495  ;;  %2515 = vtanh.f32 %v310_v18  ;;  %v427_v52 = vadd.f32 %v3293_v42, %v426_v49  ;;  %v2286_v53 = vpop.f32.mrb[10].mxu1 }
  0xef   :  { %v2498_v29 = vpop.eup %2497  ;;  %2517 = vtanh.f32 %v302_v22  ;;  %v438_v56 = vadd.f32 %v2286_v53, %v3293_v42  ;;  %v429_v57 = vpop.f32.mrb[11].mxu1 }
  0xf0   :  { %v2500_v31 = vpop.eup %2499  ;;  %2519 = vtanh.f32 %v419_v20  ;;  %v430_v61 = vadd.f32 %v3293_v42, %v429_v57 }
  0xf1   :  { %v2502_v32 = vpop.eup %2501  ;;  %v2257_v33 = vpop.f32.mrb[12].mxu0  ;;  %v588_v34 = vpack.c.bf16 %v2500_v31, %v2496_v25  ;;  %2521 = vtanh.f32 %v411_v23 }
  0xf2   :  { %v3327_v35 = vpop.eup %2503  ;;  %v323_v36 = vadd.f32 %v2257_v33, %v3293_v42  ;;  %v314_v37 = vpop.f32.mrb[13].mxu0  ;;  %v587_v38 = vpack.c.bf16 %v2502_v32, %v2498_v29  ;;  %2523 = vtanh.f32 %v422_v26 }
  0xf3   :  { %v3333_v40 = vpop.eup %2505  ;;  %v315_v41 = vadd.f32 %v3293_v42, %v314_v37  ;;  %v2258_v43 = vpop.f32.mrb[14].mxu0  ;;  %2525 = vtanh.f32 %v414_v30 }
  0xf4   :  { %v3336_v45 = vpop.eup %2507  ;;  %2527 = vtanh.f32 %v323_v36  ;;  %v326_v46 = vadd.f32 %v2258_v43, %v3293_v42  ;;  %v317_v47 = vpop.f32.mrb[15].mxu0  ;;  %2327 = vmatprep.mubr.bf16.mxu1 %v587_v38 }
  0xf5   :  { %v3340_v50 = vpop.eup %2509  ;;  %2529 = vtanh.f32 %v315_v41  ;;  %v318_v51 = vadd.f32 %v3293_v42, %v317_v47  ;;  %2328 = vmatmul.mubr.bf16.gmra.mrb[36].mxu1 %v588_v34  ;;  %v602_v54 = vpack.c.bf16 %v3336_v45, %v3327_v35  ;;  %v2289_v9 = vpop.f32.mrb[12].mxu1  ;;  %v2485_v35 = vld [vmem:[%s4316_s5 + $0x30] sm:$0xff]   ;;  %v3473_v45 = vld [vmem:[%s4317_s4] ss:$0 sm:$0xff] }
  0xf6   :  { %v2512_v55 = vpop.eup %2511  ;;  %2531 = vtanh.f32 %v326_v46  ;;  %v601_v58 = vpack.c.bf16 %v3340_v50, %v3333_v40  ;;  %v451_v13 = vadd.f32 %v2289_v9, %v3293_v42  ;;  %v442_v14 = vpop.f32.mrb[13].mxu1  ;;  %2399 = vmatprep.subr.bf16.mxu0 %v2485_v35  ;;  %v2486_v40 = vld [vmem:[%s4316_s5 + $0x38] sm:$0xff]  }
  0xf7   :  { %v2514_v60 = vpop.eup %2513  ;;  %2533 = vtanh.f32 %v318_v51  ;;  %v443_v17 = vadd.f32 %v3293_v42, %v442_v14  ;;  %v2290_v18 = vpop.f32.mrb[14].mxu1  ;;  %2400 = vmatpush3.bf16.msra.mxu0 %v2485_v35 }
  0xf8   :  { %v2516_v62 = vpop.eup %2515  ;;  %2535 = vtanh.f32 %v435_v48  ;;  %v454_v21 = vadd.f32 %v2290_v18, %v3293_v42  ;;  %v445_v22 = vpop.f32.mrb[15].mxu1  ;;  %2401 = vmatprep.subr.bf16.mxu0 %v2486_v40 }
  0xf9   :  { %v2518_v63 = vpop.eup %2517  ;;  %v2261_v0 = vpop.f32.mrb[16].mxu0  ;;  %v590_v1 = vpack.c.bf16 %v2516_v62, %v2512_v55  ;;  %2537 = vtanh.f32 %v427_v52  ;;  %v446_v25 = vadd.f32 %v3293_v42, %v445_v22 }
  0xfa   :  { %v3353_v2 = vpop.eup %2519  ;;  %v339_v3 = vadd.f32 %v2261_v0, %v3293_v42  ;;  %v330_v4 = vpop.f32.mrb[17].mxu0  ;;  %v589_v5 = vpack.c.bf16 %v2518_v63, %v2514_v60  ;;  %2539 = vtanh.f32 %v438_v56 }
  0xfb   :  { %v3356_v6 = vpop.eup %2521  ;;  %v331_v7 = vadd.f32 %v3293_v42, %v330_v4  ;;  %v2262_v8 = vpop.f32.mrb[18].mxu0  ;;  %2541 = vtanh.f32 %v430_v61  ;;  %2402 = vmatpush3.bf16.msra.mxu0 %v2486_v40 }
  0xfc   :  { %v3359_v10 = vpop.eup %2523  ;;  %2543 = vtanh.f32 %v339_v3  ;;  %v342_v11 = vadd.f32 %v2262_v8, %v3293_v42  ;;  %v333_v12 = vpop.f32.mrb[19].mxu0  ;;  %2331 = vmatprep.mubr.bf16.mxu1 %v589_v5 }
  0xfd   :  { %v3363_v15 = vpop.eup %2525  ;;  %2545 = vtanh.f32 %v331_v7  ;;  %v334_v16 = vadd.f32 %v3293_v42, %v333_v12  ;;  %2332 = vmatmul.mubr.bf16.gmra.mrb[40].mxu1 %v590_v1  ;;  %v604_v19 = vpack.c.bf16 %v3359_v10, %v3353_v2  ;;  %v2293_v38 = vpop.f32.mrb[16].mxu1 }
  0xfe   :  { %v2528_v20 = vpop.eup %2527  ;;  %2547 = vtanh.f32 %v342_v11  ;;  %v603_v23 = vpack.c.bf16 %v3363_v15, %v3356_v6  ;;  %v467_v44 = vadd.f32 %v2293_v38, %v3293_v42  ;;  %v458_v46 = vpop.f32.mrb[17].mxu1 }
  0xff   :  { %v2530_v24 = vpop.eup %2529  ;;  %2549 = vtanh.f32 %v334_v16  ;;  %v459_v49 = vadd.f32 %v3293_v42, %v458_v46  ;;  %v2294_v51 = vpop.f32.mrb[18].mxu1 }
 0x100   :  { %v2532_v26 = vpop.eup %2531  ;;  %2551 = vtanh.f32 %v451_v13  ;;  %v470_v55 = vadd.f32 %v2294_v51, %v3293_v42  ;;  %v461_v56 = vpop.f32.mrb[19].mxu1 }
 0x101   :  { %v2534_v27 = vpop.eup %2533  ;;  %v2265_v28 = vpop.f32.mrb[20].mxu0  ;;  %v592_v29 = vpack.c.bf16 %v2532_v26, %v2528_v20  ;;  %2553 = vtanh.f32 %v443_v17  ;;  %v462_v60 = vadd.f32 %v3293_v42, %v461_v56 }
 0x102   :  { %v3373_v30 = vpop.eup %2535  ;;  %v355_v31 = vadd.f32 %v2265_v28, %v3293_v42  ;;  %v346_v32 = vpop.f32.mrb[21].mxu0  ;;  %v591_v33 = vpack.c.bf16 %v2534_v27, %v2530_v24  ;;  %2555 = vtanh.f32 %v454_v21 }
 0x103   :  { %v3376_v34 = vpop.eup %2537  ;;  %v347_v36 = vadd.f32 %v3293_v42, %v346_v32  ;;  %v2266_v37 = vpop.f32.mrb[22].mxu0  ;;  %2557 = vtanh.f32 %v446_v25 }
 0x104   :  { %v3379_v39 = vpop.eup %2539  ;;  %2559 = vtanh.f32 %v355_v31  ;;  %v358_v41 = vadd.f32 %v2266_v37, %v3293_v42  ;;  %v349_v43 = vpop.f32.mrb[23].mxu0  ;;  %2335 = vmatprep.mubr.bf16.mxu1 %v591_v33 }
 0x105   :  { %v3383_v47 = vpop.eup %2541  ;;  %2561 = vtanh.f32 %v347_v36  ;;  %v350_v48 = vadd.f32 %v3293_v42, %v349_v43  ;;  %2336 = vmatmul.mubr.bf16.gmra.mrb[44].mxu1 %v592_v29  ;;  %v606_v52 = vpack.c.bf16 %v3379_v39, %v3373_v30  ;;  %v2297_v11 = vpop.f32.mrb[20].mxu1 }
 0x106   :  { %v2544_v53 = vpop.eup %2543  ;;  %2563 = vtanh.f32 %v358_v41  ;;  %v605_v57 = vpack.c.bf16 %v3383_v47, %v3376_v34  ;;  %v483_v16 = vadd.f32 %v2297_v11, %v3293_v42  ;;  %v474_v17 = vpop.f32.mrb[21].mxu1 }
 0x107   :  { %v2546_v59 = vpop.eup %2545  ;;  %2565 = vtanh.f32 %v350_v48  ;;  %v475_v21 = vadd.f32 %v3293_v42, %v474_v17  ;;  %v2298_v22 = vpop.f32.mrb[22].mxu1 }
 0x108   :  { %v2548_v61 = vpop.eup %2547  ;;  %2567 = vtanh.f32 %v467_v44  ;;  %v486_v26 = vadd.f32 %v2298_v22, %v3293_v42  ;;  %v477_v27 = vpop.f32.mrb[23].mxu1 }
 0x109   :  { %v2550_v62 = vpop.eup %2549  ;;  %v2269_v63 = vpop.f32.mrb[24].mxu0  ;;  %v594_v0 = vpack.c.bf16 %v2548_v61, %v2544_v53  ;;  %2569 = vtanh.f32 %v459_v49  ;;  %v478_v31 = vadd.f32 %v3293_v42, %v477_v27 }
 0x10a   :  { %v3393_v1 = vpop.eup %2551  ;;  %v371_v3 = vadd.f32 %v2269_v63, %v3293_v42  ;;  %v362_v4 = vpop.f32.mrb[25].mxu0  ;;  %v593_v5 = vpack.c.bf16 %v2550_v62, %v2546_v59  ;;  %2571 = vtanh.f32 %v470_v55 }
 0x10b   :  { %v3396_v7 = vpop.eup %2553  ;;  %v363_v8 = vadd.f32 %v3293_v42, %v362_v4  ;;  %v2270_v9 = vpop.f32.mrb[26].mxu0  ;;  %2573 = vtanh.f32 %v462_v60 }
 0x10c   :  { %v3399_v12 = vpop.eup %2555  ;;  %2575 = vtanh.f32 %v371_v3  ;;  %v374_v13 = vadd.f32 %v2270_v9, %v3293_v42  ;;  %v365_v14 = vpop.f32.mrb[27].mxu0  ;;  %2339 = vmatprep.mubr.bf16.mxu1 %v593_v5 }
 0x10d   :  { %v3403_v18 = vpop.eup %2557  ;;  %2577 = vtanh.f32 %v363_v8  ;;  %v366_v20 = vadd.f32 %v3293_v42, %v365_v14  ;;  %2340 = vmatmul.mubr.bf16.gmra.mrb[48].mxu1 %v594_v0  ;;  %v608_v24 = vpack.c.bf16 %v3399_v12, %v3393_v1  ;;  %v2301_v51 = vpop.f32.mrb[24].mxu1 }
 0x10e   :  { %v2560_v25 = vpop.eup %2559  ;;  %2579 = vtanh.f32 %v374_v13  ;;  %v607_v28 = vpack.c.bf16 %v3403_v18, %v3396_v7  ;;  %v499_v59 = vadd.f32 %v2301_v51, %v3293_v42  ;;  %v490_v60 = vpop.f32.mrb[25].mxu1 }
 0x10f   :  { %v2562_v29 = vpop.eup %2561  ;;  %2581 = vtanh.f32 %v366_v20  ;;  %v491_v63 = vadd.f32 %v3293_v42, %v490_v60  ;;  %v2302_v0 = vpop.f32.mrb[26].mxu1 }
 0x110   :  { %v2564_v32 = vpop.eup %2563  ;;  %2583 = vtanh.f32 %v483_v16  ;;  %v502_v5 = vadd.f32 %v2302_v0, %v3293_v42  ;;  %v493_v8 = vpop.f32.mrb[27].mxu1 }
 0x111   :  { %v2566_v33 = vpop.eup %2565  ;;  %v2273_v36 = vpop.f32.mrb[28].mxu0  ;;  %v596_v37 = vpack.c.bf16 %v2564_v32, %v2560_v25  ;;  %2585 = vtanh.f32 %v475_v21  ;;  %v494_v13 = vadd.f32 %v3293_v42, %v493_v8 }
 0x112   :  { %v3413_v38 = vpop.eup %2567  ;;  %v387_v41 = vadd.f32 %v2273_v36, %v3293_v42  ;;  %v378_v43 = vpop.f32.mrb[29].mxu0  ;;  %v595_v44 = vpack.c.bf16 %v2566_v33, %v2562_v29  ;;  %2587 = vtanh.f32 %v486_v26 }
 0x113   :  { %v3416_v46 = vpop.eup %2569  ;;  %v379_v48 = vadd.f32 %v3293_v42, %v378_v43  ;;  %v2274_v49 = vpop.f32.mrb[30].mxu0  ;;  %2589 = vtanh.f32 %v478_v31 }
 0x114   :  { %v3419_v53 = vpop.eup %2571  ;;  %2591 = vtanh.f32 %v387_v41  ;;  %v390_v55 = vadd.f32 %v2274_v49, %v3293_v42  ;;  %v381_v56 = vpop.f32.mrb[31].mxu0  ;;  %2343 = vmatprep.mubr.bf16.mxu1 %v595_v44 }
 0x115   :  { %v3423_v61 = vpop.eup %2573  ;;  %2593 = vtanh.f32 %v379_v48  ;;  %v382_v62 = vadd.f32 %v3293_v42, %v381_v56  ;;  %2344 = vmatmul.mubr.bf16.gmra.mrb[52].mxu1 %v596_v37  ;;  %v610_v3 = vpack.c.bf16 %v3419_v53, %v3413_v38  ;;  %v2305_v25 = vpop.f32.mrb[28].mxu1 }
 0x116   :  { %v2576_v4 = vpop.eup %2575  ;;  %2595 = vtanh.f32 %v390_v55  ;;  %v609_v9 = vpack.c.bf16 %v3423_v61, %v3416_v46  ;;  %v515_v27 = vadd.f32 %v2305_v25, %v3293_v42  ;;  %v506_v29 = vpop.f32.mrb[29].mxu1 }
 0x117   :  { %v2578_v11 = vpop.eup %2577  ;;  %2597 = vtanh.f32 %v382_v62  ;;  %v507_v32 = vadd.f32 %v3293_v42, %v506_v29  ;;  %v2306_v33 = vpop.f32.mrb[30].mxu1 }
 0x118   :  { %v2580_v14 = vpop.eup %2579  ;;  %2599 = vtanh.f32 %v499_v59  ;;  %v518_v41 = vadd.f32 %v2306_v33, %v3293_v42  ;;  %v509_v43 = vpop.f32.mrb[31].mxu1 }
 0x119   :  { %v2582_v16 = vpop.eup %2581  ;;  %v598_v17 = vpack.c.bf16 %v2580_v14, %v2576_v4  ;;  %2601 = vtanh.f32 %v491_v63  ;;  %v510_v48 = vadd.f32 %v3293_v42, %v509_v43 }
 0x11a   :  { %v2584_v20 = vpop.eup %2583  ;;  %v597_v21 = vpack.c.bf16 %v2582_v16, %v2578_v11  ;;  %2603 = vtanh.f32 %v502_v5 }
 0x11b   :  { %v2586_v22 = vpop.eup %2585  ;;  %2605 = vtanh.f32 %v494_v13 }
 0x11c   :  { %v2588_v26 = vpop.eup %2587  ;;  %2347 = vmatprep.mubr.bf16.mxu1 %v597_v21  ;;  %2607 = vtanh.f32 %v515_v27 }
 0x11d   :  { %v2590_v31 = vpop.eup %2589  ;;  %2348 = vmatmul.mubr.bf16.gmra.mrb[56].mxu1 %v598_v17  ;;  %v612_v36 = vpack.c.bf16 %v2588_v26, %v2584_v20  ;;  %2609 = vtanh.f32 %v507_v32 }
 0x11e   :  { %v2592_v37 = vpop.eup %2591  ;;  %v611_v44 = vpack.c.bf16 %v2590_v31, %v2586_v22  ;;  %2611 = vtanh.f32 %v518_v41 }
 0x11f   :  { %v2594_v46 = vpop.eup %2593  ;;  %2613 = vtanh.f32 %v510_v48 }
 0x120   :  { %v2596_v49 = vpop.eup %2595 }
 0x121   :  { %v2598_v51 = vpop.eup %2597  ;;  %v600_v55 = vpack.c.bf16 %v2596_v49, %v2592_v37 }
 0x122   :  { %v2600_v56 = vpop.eup %2599  ;;  %v599_v59 = vpack.c.bf16 %v2598_v51, %v2594_v46 }
 0x123   :  { %v2602_v60 = vpop.eup %2601 }
 0x124   :  { %v2604_v61 = vpop.eup %2603  ;;  %2351 = vmatprep.mubr.bf16.mxu1 %v599_v59 }
 0x125   :  { %v2606_v62 = vpop.eup %2605  ;;  %2352 = vmatmul.mubr.bf16.gmra.mrb[60].mxu1 %v600_v55  ;;  %v614_v63 = vpack.c.bf16 %v2604_v61, %v2600_v56 }
 0x126   :  { %2355 = vmatprep.mubr.bf16.mxu1 %v601_v58  ;;  %v613_v0 = vpack.c.bf16 %v2606_v62, %v2602_v60  ;;  %v2608_v4 = vpop.eup %2607 }
 0x127   :  { %v2610_v42 = vpop.eup %2609 }
 0x128   :  { %v2612_v5 = vpop.eup %2611 }
 0x129   :  { %v2614_v8 = vpop.eup %2613  ;;  %v616_v11 = vpack.c.bf16 %v2612_v5, %v2608_v4 }
 0x12a   :  { %v615_v13 = vpack.c.bf16 %v2614_v8, %v2610_v42 }
 0x12d   :  { %2356 = vmatmul.mubr.bf16.gmra.mrb[64].mxu1 %v602_v54 }
 0x12e   :  { %2359 = vmatprep.mubr.bf16.mxu1 %v603_v23 }
 0x135   :  { %2360 = vmatmul.mubr.bf16.gmra.mrb[68].mxu1 %v604_v19 }
 0x136   :  { %2363 = vmatprep.mubr.bf16.mxu1 %v605_v57 }
 0x13d   :  { %2364 = vmatmul.mubr.bf16.gmra.mrb[72].mxu1 %v606_v52 }
 0x13e   :  { %2367 = vmatprep.mubr.bf16.mxu1 %v607_v28 }
 0x145   :  { %2368 = vmatmul.mubr.bf16.gmra.mrb[76].mxu1 %v608_v24 }
 0x146   :  { %2371 = vmatprep.mubr.bf16.mxu1 %v609_v9 }
 0x14d   :  { %2372 = vmatmul.mubr.bf16.gmra.mrb[80].mxu1 %v610_v3 }
 0x14e   :  { %2375 = vmatprep.mubr.bf16.mxu1 %v611_v44 }
 0x155   :  { %2376 = vmatmul.mubr.bf16.gmra.mrb[84].mxu1 %v612_v36 }
 0x156   :  { %2379 = vmatprep.mubr.bf16.mxu1 %v613_v0 }
 0x15d   :  { %2380 = vmatmul.mubr.bf16.gmra.mrb[88].mxu1 %v614_v63 }
 0x15e   :  { %2383 = vmatprep.mubr.bf16.mxu1 %v615_v13 }
 0x165   :  { %2384 = vmatmul.mubr.bf16.gmra.mrb[92].mxu1 %v616_v11 }
 0x1c0   :  { %v2325_v50 = vpop.f32.mrb[32].mxu1 }
 0x1c1   :  { %v731_v54 = vadd.f32 %v2325_v50, %v3473_v45  ;;  %v722_v58 = vpop.f32.mrb[33].mxu1 }
 0x1c2   :  { %v723_v2 = vadd.f32 %v3473_v45, %v722_v58  ;;  %v2326_v6 = vpop.f32.mrb[34].mxu1 }
 0x1c3   :  { %2615 = vtanh.f32 %v731_v54  ;;  %v734_v10 = vadd.f32 %v2326_v6, %v3473_v45  ;;  %v725_v15 = vpop.f32.mrb[35].mxu1 }
 0x1c4   :  { %2617 = vtanh.f32 %v723_v2  ;;  %v726_v19 = vadd.f32 %v3473_v45, %v725_v15 }
 0x1c5   :  { %2619 = vtanh.f32 %v734_v10 }
 0x1c6   :  { %2621 = vtanh.f32 %v726_v19 }
 0x1c8   :  { %v2329_v23 = vpop.f32.mrb[36].mxu1 }
 0x1c9   :  { %v747_v30 = vadd.f32 %v2329_v23, %v3473_v45  ;;  %v738_v34 = vpop.f32.mrb[37].mxu1 }
 0x1ca   :  { %v739_v39 = vadd.f32 %v3473_v45, %v738_v34  ;;  %v2330_v47 = vpop.f32.mrb[38].mxu1 }
 0x1cb   :  { %2623 = vtanh.f32 %v747_v30  ;;  %v750_v52 = vadd.f32 %v2330_v47, %v3473_v45  ;;  %v741_v57 = vpop.f32.mrb[39].mxu1 }
 0x1cc   :  { %2625 = vtanh.f32 %v739_v39  ;;  %v742_v1 = vadd.f32 %v3473_v45, %v741_v57 }
 0x1cd   :  { %v2616_v7 = vpop.eup %2615  ;;  %2627 = vtanh.f32 %v750_v52 }
 0x1ce   :  { %v2618_v12 = vpop.eup %2617  ;;  %2629 = vtanh.f32 %v742_v1 }
 0x1cf   :  { %v2620_v18 = vpop.eup %2619 }
 0x1d0   :  { %v2622_v24 = vpop.eup %2621  ;;  %v2333_v28 = vpop.f32.mrb[40].mxu1  ;;  %v1042_v38 = vpack.c.bf16 %v2620_v18, %v2616_v7 }
 0x1d1   :  { %v763_v53 = vadd.f32 %v2333_v28, %v3473_v45  ;;  %v754_v3 = vpop.f32.mrb[41].mxu1  ;;  %v1041_v9 = vpack.c.bf16 %v2622_v24, %v2618_v12 }
 0x1d2   :  { %v755_v14 = vadd.f32 %v3473_v45, %v754_v3  ;;  %v2334_v16 = vpop.f32.mrb[42].mxu1 }
 0x1d3   :  { %2631 = vtanh.f32 %v763_v53  ;;  %v766_v17 = vadd.f32 %v2334_v16, %v3473_v45  ;;  %v757_v20 = vpop.f32.mrb[43].mxu1  ;;  %2403 = vmatprep.mubr.bf16.mxu0 %v1041_v9 }
 0x1d4   :  { %2633 = vtanh.f32 %v755_v14  ;;  %v758_v21 = vadd.f32 %v3473_v45, %v757_v20  ;;  %2404 = vmatmul.mubr.bf16.vlgmr.msra.gmra.mrb[32].mxu0 %v1042_v38 }
 0x1d5   :  { %v2624_v22 = vpop.eup %2623  ;;  %2635 = vtanh.f32 %v766_v17 }
 0x1d6   :  { %v2626_v25 = vpop.eup %2625  ;;  %2637 = vtanh.f32 %v758_v21 }
 0x1d7   :  { %v2628_v26 = vpop.eup %2627 }
 0x1d8   :  { %v2630_v27 = vpop.eup %2629  ;;  %v2337_v29 = vpop.f32.mrb[44].mxu1  ;;  %v1044_v31 = vpack.c.bf16 %v2628_v26, %v2624_v22 }
 0x1d9   :  { %v779_v32 = vadd.f32 %v2337_v29, %v3473_v45  ;;  %v770_v33 = vpop.f32.mrb[45].mxu1  ;;  %v1043_v36 = vpack.c.bf16 %v2630_v27, %v2626_v25 }
 0x1da   :  { %v771_v37 = vadd.f32 %v3473_v45, %v770_v33  ;;  %v2338_v41 = vpop.f32.mrb[46].mxu1 }
 0x1db   :  { %2639 = vtanh.f32 %v779_v32  ;;  %v782_v43 = vadd.f32 %v2338_v41, %v3473_v45  ;;  %v773_v44 = vpop.f32.mrb[47].mxu1  ;;  %2407 = vmatprep.mubr.bf16.mxu0 %v1043_v36 }
 0x1dc   :  { %2641 = vtanh.f32 %v771_v37  ;;  %v774_v46 = vadd.f32 %v3473_v45, %v773_v44  ;;  %2408 = vmatmul.mubr.bf16.gmra.mrb[36].mxu0 %v1044_v31 }
 0x1dd   :  { %v2632_v48 = vpop.eup %2631  ;;  %2643 = vtanh.f32 %v782_v43 }
 0x1de   :  { %v2634_v49 = vpop.eup %2633  ;;  %2645 = vtanh.f32 %v774_v46 }
 0x1df   :  { %v2636_v51 = vpop.eup %2635 }
 0x1e0   :  { %v2638_v55 = vpop.eup %2637  ;;  %v2341_v56 = vpop.f32.mrb[48].mxu1  ;;  %v1046_v59 = vpack.c.bf16 %v2636_v51, %v2632_v48 }
 0x1e1   :  { %v795_v60 = vadd.f32 %v2341_v56, %v3473_v45  ;;  %v786_v61 = vpop.f32.mrb[49].mxu1  ;;  %v1045_v62 = vpack.c.bf16 %v2638_v55, %v2634_v49 }
 0x1e2   :  { %v787_v63 = vadd.f32 %v3473_v45, %v786_v61  ;;  %v2342_v0 = vpop.f32.mrb[50].mxu1 }
 0x1e3   :  { %2647 = vtanh.f32 %v795_v60  ;;  %v798_v4 = vadd.f32 %v2342_v0, %v3473_v45  ;;  %v789_v42 = vpop.f32.mrb[51].mxu1  ;;  %2411 = vmatprep.mubr.bf16.mxu0 %v1045_v62 }
 0x1e4   :  { %2649 = vtanh.f32 %v787_v63  ;;  %v790_v5 = vadd.f32 %v3473_v45, %v789_v42  ;;  %2412 = vmatmul.mubr.bf16.gmra.mrb[40].mxu0 %v1046_v59 }
 0x1e5   :  { %v2640_v8 = vpop.eup %2639  ;;  %2651 = vtanh.f32 %v798_v4 }
 0x1e6   :  { %v2642_v11 = vpop.eup %2641  ;;  %2653 = vtanh.f32 %v790_v5 }
 0x1e7   :  { %v2644_v13 = vpop.eup %2643 }
 0x1e8   :  { %v2646_v35 = vpop.eup %2645  ;;  %v2345_v40 = vpop.f32.mrb[52].mxu1  ;;  %v1048_v50 = vpack.c.bf16 %v2644_v13, %v2640_v8 }
 0x1e9   :  { %v811_v54 = vadd.f32 %v2345_v40, %v3473_v45  ;;  %v802_v58 = vpop.f32.mrb[53].mxu1  ;;  %v1047_v2 = vpack.c.bf16 %v2646_v35, %v2642_v11 }
 0x1ea   :  { %v803_v6 = vadd.f32 %v3473_v45, %v802_v58  ;;  %v2346_v10 = vpop.f32.mrb[54].mxu1 }
 0x1eb   :  { %2655 = vtanh.f32 %v811_v54  ;;  %v814_v15 = vadd.f32 %v2346_v10, %v3473_v45  ;;  %v805_v19 = vpop.f32.mrb[55].mxu1  ;;  %2415 = vmatprep.mubr.bf16.mxu0 %v1047_v2 }
 0x1ec   :  { %2657 = vtanh.f32 %v803_v6  ;;  %v806_v23 = vadd.f32 %v3473_v45, %v805_v19  ;;  %2416 = vmatmul.mubr.bf16.gmra.mrb[44].mxu0 %v1048_v50 }
 0x1ed   :  { %v2648_v30 = vpop.eup %2647  ;;  %2659 = vtanh.f32 %v814_v15 }
 0x1ee   :  { %v2650_v34 = vpop.eup %2649  ;;  %2661 = vtanh.f32 %v806_v23 }
 0x1ef   :  { %v2652_v39 = vpop.eup %2651 }
 0x1f0   :  { %v2654_v47 = vpop.eup %2653  ;;  %v2349_v52 = vpop.f32.mrb[56].mxu1  ;;  %v1050_v57 = vpack.c.bf16 %v2652_v39, %v2648_v30 }
 0x1f1   :  { %v827_v1 = vadd.f32 %v2349_v52, %v3473_v45  ;;  %v818_v7 = vpop.f32.mrb[57].mxu1  ;;  %v1049_v12 = vpack.c.bf16 %v2654_v47, %v2650_v34 }
 0x1f2   :  { %v819_v18 = vadd.f32 %v3473_v45, %v818_v7  ;;  %v2350_v24 = vpop.f32.mrb[58].mxu1 }
 0x1f3   :  { %2663 = vtanh.f32 %v827_v1  ;;  %v830_v28 = vadd.f32 %v2350_v24, %v3473_v45  ;;  %v821_v38 = vpop.f32.mrb[59].mxu1  ;;  %2419 = vmatprep.mubr.bf16.mxu0 %v1049_v12 }
 0x1f4   :  { %2665 = vtanh.f32 %v819_v18  ;;  %v822_v53 = vadd.f32 %v3473_v45, %v821_v38  ;;  %2420 = vmatmul.mubr.bf16.gmra.mrb[48].mxu0 %v1050_v57 }
 0x1f5   :  { %v2656_v3 = vpop.eup %2655  ;;  %2667 = vtanh.f32 %v830_v28 }
 0x1f6   :  { %v2658_v9 = vpop.eup %2657  ;;  %2669 = vtanh.f32 %v822_v53 }
 0x1f7   :  { %v2660_v14 = vpop.eup %2659 }
 0x1f8   :  { %v2662_v16 = vpop.eup %2661  ;;  %v2353_v17 = vpop.f32.mrb[60].mxu1  ;;  %v1052_v20 = vpack.c.bf16 %v2660_v14, %v2656_v3 }
 0x1f9   :  { %v843_v21 = vadd.f32 %v2353_v17, %v3473_v45  ;;  %v834_v22 = vpop.f32.mrb[61].mxu1  ;;  %v1051_v25 = vpack.c.bf16 %v2662_v16, %v2658_v9 }
 0x1fa   :  { %v835_v26 = vadd.f32 %v3473_v45, %v834_v22  ;;  %v2354_v27 = vpop.f32.mrb[62].mxu1 }
 0x1fb   :  { %2671 = vtanh.f32 %v843_v21  ;;  %v846_v29 = vadd.f32 %v2354_v27, %v3473_v45  ;;  %v837_v31 = vpop.f32.mrb[63].mxu1  ;;  %2423 = vmatprep.mubr.bf16.mxu0 %v1051_v25 }
 0x1fc   :  { %2673 = vtanh.f32 %v835_v26  ;;  %v838_v32 = vadd.f32 %v3473_v45, %v837_v31  ;;  %2424 = vmatmul.mubr.bf16.gmra.mrb[52].mxu0 %v1052_v20 }
 0x1fd   :  { %v2664_v33 = vpop.eup %2663  ;;  %2675 = vtanh.f32 %v846_v29 }
 0x1fe   :  { %v2666_v36 = vpop.eup %2665  ;;  %2677 = vtanh.f32 %v838_v32 }
 0x1ff   :  { %v2668_v37 = vpop.eup %2667 }
 0x200   :  { %v2670_v41 = vpop.eup %2669  ;;  %v2357_v43 = vpop.f32.mrb[64].mxu1  ;;  %v1054_v44 = vpack.c.bf16 %v2668_v37, %v2664_v33 }
 0x201   :  { %v859_v46 = vadd.f32 %v2357_v43, %v3473_v45  ;;  %v850_v48 = vpop.f32.mrb[65].mxu1  ;;  %v1053_v49 = vpack.c.bf16 %v2670_v41, %v2666_v36 }
 0x202   :  { %v851_v51 = vadd.f32 %v3473_v45, %v850_v48  ;;  %v2358_v55 = vpop.f32.mrb[66].mxu1 }
 0x203   :  { %2679 = vtanh.f32 %v859_v46  ;;  %v862_v56 = vadd.f32 %v2358_v55, %v3473_v45  ;;  %v853_v59 = vpop.f32.mrb[67].mxu1  ;;  %2427 = vmatprep.mubr.bf16.mxu0 %v1053_v49 }
 0x204   :  { %2681 = vtanh.f32 %v851_v51  ;;  %v854_v60 = vadd.f32 %v3473_v45, %v853_v59  ;;  %2428 = vmatmul.mubr.bf16.gmra.mrb[56].mxu0 %v1054_v44 }
 0x205   :  { %v2672_v61 = vpop.eup %2671  ;;  %2683 = vtanh.f32 %v862_v56 }
 0x206   :  { %v2674_v62 = vpop.eup %2673  ;;  %2685 = vtanh.f32 %v854_v60 }
 0x207   :  { %v2676_v63 = vpop.eup %2675 }
 0x208   :  { %v2678_v0 = vpop.eup %2677  ;;  %v2361_v4 = vpop.f32.mrb[68].mxu1  ;;  %v1056_v42 = vpack.c.bf16 %v2676_v63, %v2672_v61 }
 0x209   :  { %v875_v5 = vadd.f32 %v2361_v4, %v3473_v45  ;;  %v866_v8 = vpop.f32.mrb[69].mxu1  ;;  %v1055_v11 = vpack.c.bf16 %v2678_v0, %v2674_v62 }
 0x20a   :  { %v867_v13 = vadd.f32 %v3473_v45, %v866_v8  ;;  %v2362_v35 = vpop.f32.mrb[70].mxu1 }
 0x20b   :  { %2687 = vtanh.f32 %v875_v5  ;;  %v878_v40 = vadd.f32 %v2362_v35, %v3473_v45  ;;  %v869_v50 = vpop.f32.mrb[71].mxu1  ;;  %2431 = vmatprep.mubr.bf16.mxu0 %v1055_v11 }
 0x20c   :  { %2689 = vtanh.f32 %v867_v13  ;;  %v870_v54 = vadd.f32 %v3473_v45, %v869_v50  ;;  %2432 = vmatmul.mubr.bf16.gmra.mrb[60].mxu0 %v1056_v42 }
 0x20d   :  { %v2680_v58 = vpop.eup %2679  ;;  %2691 = vtanh.f32 %v878_v40 }
 0x20e   :  { %v2682_v2 = vpop.eup %2681  ;;  %2693 = vtanh.f32 %v870_v54 }
 0x20f   :  { %v2684_v6 = vpop.eup %2683 }
 0x210   :  { %v2686_v10 = vpop.eup %2685  ;;  %v2365_v15 = vpop.f32.mrb[72].mxu1  ;;  %v1058_v19 = vpack.c.bf16 %v2684_v6, %v2680_v58 }
 0x211   :  { %v891_v23 = vadd.f32 %v2365_v15, %v3473_v45  ;;  %v882_v30 = vpop.f32.mrb[73].mxu1  ;;  %v1057_v34 = vpack.c.bf16 %v2686_v10, %v2682_v2 }
 0x212   :  { %v883_v39 = vadd.f32 %v3473_v45, %v882_v30  ;;  %v2366_v47 = vpop.f32.mrb[74].mxu1 }
 0x213   :  { %2695 = vtanh.f32 %v891_v23  ;;  %v894_v52 = vadd.f32 %v2366_v47, %v3473_v45  ;;  %v885_v57 = vpop.f32.mrb[75].mxu1  ;;  %2435 = vmatprep.mubr.bf16.mxu0 %v1057_v34 }
 0x214   :  { %2697 = vtanh.f32 %v883_v39  ;;  %v886_v1 = vadd.f32 %v3473_v45, %v885_v57  ;;  %2436 = vmatmul.mubr.bf16.gmra.mrb[64].mxu0 %v1058_v19 }
 0x215   :  { %v2688_v7 = vpop.eup %2687  ;;  %2699 = vtanh.f32 %v894_v52 }
 0x216   :  { %v2690_v12 = vpop.eup %2689  ;;  %2701 = vtanh.f32 %v886_v1 }
 0x217   :  { %v2692_v18 = vpop.eup %2691 }
 0x218   :  { %v2694_v24 = vpop.eup %2693  ;;  %v2369_v28 = vpop.f32.mrb[76].mxu1  ;;  %v1060_v38 = vpack.c.bf16 %v2692_v18, %v2688_v7 }
 0x219   :  { %v907_v53 = vadd.f32 %v2369_v28, %v3473_v45  ;;  %v898_v3 = vpop.f32.mrb[77].mxu1  ;;  %v1059_v9 = vpack.c.bf16 %v2694_v24, %v2690_v12 }
 0x21a   :  { %v899_v14 = vadd.f32 %v3473_v45, %v898_v3  ;;  %v2370_v16 = vpop.f32.mrb[78].mxu1 }
 0x21b   :  { %2703 = vtanh.f32 %v907_v53  ;;  %v910_v17 = vadd.f32 %v2370_v16, %v3473_v45  ;;  %v901_v20 = vpop.f32.mrb[79].mxu1  ;;  %2439 = vmatprep.mubr.bf16.mxu0 %v1059_v9 }
 0x21c   :  { %2705 = vtanh.f32 %v899_v14  ;;  %v902_v21 = vadd.f32 %v3473_v45, %v901_v20  ;;  %2440 = vmatmul.mubr.bf16.gmra.mrb[68].mxu0 %v1060_v38 }
 0x21d   :  { %v2696_v22 = vpop.eup %2695  ;;  %2707 = vtanh.f32 %v910_v17 }
 0x21e   :  { %v2698_v25 = vpop.eup %2697  ;;  %2709 = vtanh.f32 %v902_v21 }
 0x21f   :  { %v2700_v26 = vpop.eup %2699 }
 0x220   :  { %v2702_v27 = vpop.eup %2701  ;;  %v2373_v29 = vpop.f32.mrb[80].mxu1  ;;  %v1062_v31 = vpack.c.bf16 %v2700_v26, %v2696_v22 }
 0x221   :  { %v923_v32 = vadd.f32 %v2373_v29, %v3473_v45  ;;  %v914_v33 = vpop.f32.mrb[81].mxu1  ;;  %v1061_v36 = vpack.c.bf16 %v2702_v27, %v2698_v25 }
 0x222   :  { %v915_v37 = vadd.f32 %v3473_v45, %v914_v33  ;;  %v2374_v41 = vpop.f32.mrb[82].mxu1 }
 0x223   :  { %2711 = vtanh.f32 %v923_v32  ;;  %v926_v43 = vadd.f32 %v2374_v41, %v3473_v45  ;;  %v917_v44 = vpop.f32.mrb[83].mxu1  ;;  %2443 = vmatprep.mubr.bf16.mxu0 %v1061_v36 }
 0x224   :  { %2713 = vtanh.f32 %v915_v37  ;;  %v918_v46 = vadd.f32 %v3473_v45, %v917_v44  ;;  %2444 = vmatmul.mubr.bf16.gmra.mrb[72].mxu0 %v1062_v31 }
 0x225   :  { %v2704_v48 = vpop.eup %2703  ;;  %2715 = vtanh.f32 %v926_v43 }
 0x226   :  { %v2706_v49 = vpop.eup %2705  ;;  %2717 = vtanh.f32 %v918_v46 }
 0x227   :  { %v2708_v51 = vpop.eup %2707 }
 0x228   :  { %v2710_v55 = vpop.eup %2709  ;;  %v2377_v56 = vpop.f32.mrb[84].mxu1  ;;  %v1064_v59 = vpack.c.bf16 %v2708_v51, %v2704_v48 }
 0x229   :  { %v939_v60 = vadd.f32 %v2377_v56, %v3473_v45  ;;  %v930_v61 = vpop.f32.mrb[85].mxu1  ;;  %v1063_v62 = vpack.c.bf16 %v2710_v55, %v2706_v49 }
 0x22a   :  { %v931_v63 = vadd.f32 %v3473_v45, %v930_v61  ;;  %v2378_v0 = vpop.f32.mrb[86].mxu1 }
 0x22b   :  { %2719 = vtanh.f32 %v939_v60  ;;  %v942_v4 = vadd.f32 %v2378_v0, %v3473_v45  ;;  %v933_v42 = vpop.f32.mrb[87].mxu1  ;;  %2447 = vmatprep.mubr.bf16.mxu0 %v1063_v62 }
 0x22c   :  { %2721 = vtanh.f32 %v931_v63  ;;  %v934_v5 = vadd.f32 %v3473_v45, %v933_v42  ;;  %2448 = vmatmul.mubr.bf16.gmra.mrb[76].mxu0 %v1064_v59 }
 0x22d   :  { %v2712_v8 = vpop.eup %2711  ;;  %2723 = vtanh.f32 %v942_v4 }
 0x22e   :  { %v2714_v11 = vpop.eup %2713  ;;  %2725 = vtanh.f32 %v934_v5 }
 0x22f   :  { %v2716_v13 = vpop.eup %2715 }
 0x230   :  { %v2718_v35 = vpop.eup %2717  ;;  %v2381_v40 = vpop.f32.mrb[88].mxu1  ;;  %v1066_v50 = vpack.c.bf16 %v2716_v13, %v2712_v8 }
 0x231   :  { %v955_v54 = vadd.f32 %v2381_v40, %v3473_v45  ;;  %v946_v58 = vpop.f32.mrb[89].mxu1  ;;  %v1065_v2 = vpack.c.bf16 %v2718_v35, %v2714_v11 }
 0x232   :  { %v947_v6 = vadd.f32 %v3473_v45, %v946_v58  ;;  %v2382_v10 = vpop.f32.mrb[90].mxu1 }
 0x233   :  { %2727 = vtanh.f32 %v955_v54  ;;  %v958_v15 = vadd.f32 %v2382_v10, %v3473_v45  ;;  %v949_v19 = vpop.f32.mrb[91].mxu1  ;;  %2451 = vmatprep.mubr.bf16.mxu0 %v1065_v2 }
 0x234   :  { %2729 = vtanh.f32 %v947_v6  ;;  %v950_v23 = vadd.f32 %v3473_v45, %v949_v19  ;;  %2452 = vmatmul.mubr.bf16.gmra.mrb[80].mxu0 %v1066_v50 }
 0x235   :  { %v2720_v30 = vpop.eup %2719  ;;  %2731 = vtanh.f32 %v958_v15 }
 0x236   :  { %v2722_v34 = vpop.eup %2721  ;;  %2733 = vtanh.f32 %v950_v23 }
 0x237   :  { %v2724_v39 = vpop.eup %2723 }
 0x238   :  { %v2726_v47 = vpop.eup %2725  ;;  %v2385_v52 = vpop.f32.mrb[92].mxu1  ;;  %v1068_v57 = vpack.c.bf16 %v2724_v39, %v2720_v30 }
 0x239   :  { %v971_v1 = vadd.f32 %v2385_v52, %v3473_v45  ;;  %v962_v7 = vpop.f32.mrb[93].mxu1  ;;  %v1067_v12 = vpack.c.bf16 %v2726_v47, %v2722_v34 }
 0x23a   :  { %v963_v18 = vadd.f32 %v3473_v45, %v962_v7  ;;  %v2386_v24 = vpop.f32.mrb[94].mxu1 }
 0x23b   :  { %2735 = vtanh.f32 %v971_v1  ;;  %v974_v28 = vadd.f32 %v2386_v24, %v3473_v45  ;;  %v965_v38 = vpop.f32.mrb[95].mxu1  ;;  %2455 = vmatprep.mubr.bf16.mxu0 %v1067_v12 }
 0x23c   :  { %2737 = vtanh.f32 %v963_v18  ;;  %v966_v53 = vadd.f32 %v3473_v45, %v965_v38  ;;  %2456 = vmatmul.mubr.bf16.gmra.mrb[84].mxu0 %v1068_v57  ;;  %v3542_v45 = vld [vmem:[%s4318_s6] ss:$0 sm:$0xff] }
 0x23d   :  { %v2728_v3 = vpop.eup %2727  ;;  %2739 = vtanh.f32 %v974_v28 }
 0x23e   :  { %v2730_v9 = vpop.eup %2729  ;;  %2741 = vtanh.f32 %v966_v53 }
 0x23f   :  { %v2732_v14 = vpop.eup %2731 }
 0x240   :  { %v2734_v16 = vpop.eup %2733  ;;  %v1070_v17 = vpack.c.bf16 %v2732_v14, %v2728_v3 }
 0x241   :  { %v1069_v20 = vpack.c.bf16 %v2734_v16, %v2730_v9 }
 0x243   :  { %2459 = vmatprep.mubr.bf16.mxu0 %v1069_v20 }
 0x244   :  { %2460 = vmatmul.mubr.bf16.gmra.mrb[88].mxu0 %v1070_v17 }
 0x245   :  { %v2736_v21 = vpop.eup %2735 }
 0x246   :  { %v2738_v22 = vpop.eup %2737 }
 0x247   :  { %v2740_v25 = vpop.eup %2739 }
 0x248   :  { %v2742_v26 = vpop.eup %2741  ;;  %v1072_v27 = vpack.c.bf16 %v2740_v25, %v2736_v21 }
 0x249   :  { %v1071_v29 = vpack.c.bf16 %v2742_v26, %v2738_v22 }
 0x24b   :  { %2463 = vmatprep.mubr.bf16.mxu0 %v1071_v29 }
 0x24c   :  { %2464 = vmatmul.mubr.bf16.gmra.mrb[92].mxu0 %v1072_v27 }
 0x2a7   :  { %v2405_v31 = vpop.f32.mrb[32].mxu0 }
 0x2a8   :  { %v3545_v32 = vadd.f32 %v2405_v31, %v3542_v45  ;;  %v1178_v33 = vpop.f32.mrb[33].mxu0 }
 0x2a9   :  { %v3548_v36 = vadd.f32 %v3542_v45, %v1178_v33  ;;  %v2406_v37 = vpop.f32.mrb[34].mxu0 }
 0x2aa   :  { %1437 = vmax.xlane.f32.xlu1 %v3545_v32  ;;  %v1181_v41 = vpop.f32.mrb[35].mxu0  ;;  %v3553_v43 = vadd.f32 %v2406_v37, %v3542_v45 }
 0x2ab   :  { %1433 = vmax.xlane.f32.xlu0 %v3548_v36  ;;  %v3556_v44 = vadd.f32 %v3542_v45, %v1181_v41 }
 0x2ae   :  { %1439 = vmax.xlane.f32.xlu1 %v3553_v43 }
 0x2af   :  { %v2409_v46 = vpop.f32.mrb[36].mxu0  ;;  %1435 = vmax.xlane.f32.xlu0 %v3556_v44 }
 0x2b0   :  { %v3561_v48 = vadd.f32 %v2409_v46, %v3542_v45  ;;  %v1194_v49 = vpop.f32.mrb[37].mxu0 }
 0x2b1   :  { %v2410_v51 = vpop.f32.mrb[38].mxu0  ;;  %v3569_v59 = vadd.f32 %v3542_v45, %v1194_v49 }
 0x2b2   :  { %v3564_v55 = vadd.f32 %v2410_v51, %v3542_v45  ;;  %v1197_v56 = vpop.f32.mrb[39].mxu0 }
 0x2b3   :  { %1445 = vmax.xlane.f32.xlu0 %v3561_v48  ;;  %v3572_v60 = vadd.f32 %v3542_v45, %v1197_v56 }
 0x2b4   :  { %1447 = vmax.xlane.f32.xlu1 %v3564_v55 }
 0x2b7   :  { %v2413_v61 = vpop.f32.mrb[40].mxu0  ;;  %1441 = vmax.xlane.f32.xlu0 %v3569_v59 }
 0x2b8   :  { %v3576_v62 = vadd.f32 %v2413_v61, %v3542_v45  ;;  %v1210_v63 = vpop.f32.mrb[41].mxu0  ;;  %1443 = vmax.xlane.f32.xlu1 %v3572_v60 }
 0x2b9   :  { %v2414_v0 = vpop.f32.mrb[42].mxu0  ;;  %v3585_v5 = vadd.f32 %v3542_v45, %v1210_v63 }
 0x2ba   :  { %v3580_v4 = vadd.f32 %v2414_v0, %v3542_v45  ;;  %v1213_v42 = vpop.f32.mrb[43].mxu0 }
 0x2bb   :  { %1453 = vmax.xlane.f32.xlu0 %v3576_v62  ;;  %v3588_v8 = vadd.f32 %v3542_v45, %v1213_v42 }
 0x2bc   :  { %1455 = vmax.xlane.f32.xlu1 %v3580_v4 }
 0x2bf   :  { %v2417_v11 = vpop.f32.mrb[44].mxu0  ;;  %1449 = vmax.xlane.f32.xlu0 %v3585_v5 }
 0x2c0   :  { %v3592_v13 = vadd.f32 %v2417_v11, %v3542_v45  ;;  %v1226_v35 = vpop.f32.mrb[45].mxu0  ;;  %1451 = vmax.xlane.f32.xlu1 %v3588_v8 }
 0x2c1   :  { %v2418_v40 = vpop.f32.mrb[46].mxu0  ;;  %v3601_v58 = vadd.f32 %v3542_v45, %v1226_v35 }
 0x2c2   :  { %v3596_v50 = vadd.f32 %v2418_v40, %v3542_v45  ;;  %v1229_v54 = vpop.f32.mrb[47].mxu0 }
 0x2c3   :  { %1461 = vmax.xlane.f32.xlu0 %v3592_v13  ;;  %v3604_v2 = vadd.f32 %v3542_v45, %v1229_v54 }
 0x2c4   :  { %1463 = vmax.xlane.f32.xlu1 %v3596_v50 }
 0x2c7   :  { %v2421_v6 = vpop.f32.mrb[48].mxu0  ;;  %1457 = vmax.xlane.f32.xlu0 %v3601_v58 }
 0x2c8   :  { %v3608_v10 = vadd.f32 %v2421_v6, %v3542_v45  ;;  %v1242_v15 = vpop.f32.mrb[49].mxu0  ;;  %1459 = vmax.xlane.f32.xlu1 %v3604_v2 }
 0x2c9   :  { %v2422_v19 = vpop.f32.mrb[50].mxu0  ;;  %v3617_v34 = vadd.f32 %v3542_v45, %v1242_v15 }
 0x2ca   :  { %v3612_v23 = vadd.f32 %v2422_v19, %v3542_v45  ;;  %v1245_v30 = vpop.f32.mrb[51].mxu0 }
 0x2cb   :  { %1469 = vmax.xlane.f32.xlu0 %v3608_v10  ;;  %v3620_v39 = vadd.f32 %v3542_v45, %v1245_v30 }
 0x2cc   :  { %1471 = vmax.xlane.f32.xlu1 %v3612_v23 }
 0x2cf   :  { %v2425_v47 = vpop.f32.mrb[52].mxu0  ;;  %1465 = vmax.xlane.f32.xlu0 %v3617_v34 }
 0x2d0   :  { %v3624_v52 = vadd.f32 %v2425_v47, %v3542_v45  ;;  %v1258_v57 = vpop.f32.mrb[53].mxu0  ;;  %1467 = vmax.xlane.f32.xlu1 %v3620_v39 }
 0x2d1   :  { %v2426_v1 = vpop.f32.mrb[54].mxu0  ;;  %v3633_v18 = vadd.f32 %v3542_v45, %v1258_v57 }
 0x2d2   :  { %v3628_v7 = vadd.f32 %v2426_v1, %v3542_v45  ;;  %v1261_v12 = vpop.f32.mrb[55].mxu0 }
 0x2d3   :  { %1477 = vmax.xlane.f32.xlu0 %v3624_v52  ;;  %v3636_v24 = vadd.f32 %v3542_v45, %v1261_v12 }
 0x2d4   :  { %1479 = vmax.xlane.f32.xlu1 %v3628_v7 }
 0x2d7   :  { %v2429_v28 = vpop.f32.mrb[56].mxu0  ;;  %1473 = vmax.xlane.f32.xlu0 %v3633_v18 }
 0x2d8   :  { %v3640_v38 = vadd.f32 %v2429_v28, %v3542_v45  ;;  %v1274_v53 = vpop.f32.mrb[57].mxu0  ;;  %1475 = vmax.xlane.f32.xlu1 %v3636_v24 }
 0x2d9   :  { %v2430_v3 = vpop.f32.mrb[58].mxu0  ;;  %v3649_v16 = vadd.f32 %v3542_v45, %v1274_v53 }
 0x2da   :  { %v3644_v9 = vadd.f32 %v2430_v3, %v3542_v45  ;;  %v1277_v14 = vpop.f32.mrb[59].mxu0 }
 0x2db   :  { %1485 = vmax.xlane.f32.xlu0 %v3640_v38  ;;  %v3652_v17 = vadd.f32 %v3542_v45, %v1277_v14 }
 0x2dc   :  { %1487 = vmax.xlane.f32.xlu1 %v3644_v9 }
 0x2df   :  { %v2433_v20 = vpop.f32.mrb[60].mxu0  ;;  %1481 = vmax.xlane.f32.xlu0 %v3649_v16 }
 0x2e0   :  { %v3656_v21 = vadd.f32 %v2433_v20, %v3542_v45  ;;  %v1290_v22 = vpop.f32.mrb[61].mxu0  ;;  %1483 = vmax.xlane.f32.xlu1 %v3652_v17 }
 0x2e1   :  { %v2434_v25 = vpop.f32.mrb[62].mxu0  ;;  %v3665_v29 = vadd.f32 %v3542_v45, %v1290_v22 }
 0x2e2   :  { %v3660_v26 = vadd.f32 %v2434_v25, %v3542_v45  ;;  %v1293_v27 = vpop.f32.mrb[63].mxu0 }
 0x2e3   :  { %1493 = vmax.xlane.f32.xlu0 %v3656_v21  ;;  %v3668_v31 = vadd.f32 %v3542_v45, %v1293_v27 }
 0x2e4   :  { %1495 = vmax.xlane.f32.xlu1 %v3660_v26 }
 0x2e7   :  { %v2437_v33 = vpop.f32.mrb[64].mxu0  ;;  %1489 = vmax.xlane.f32.xlu0 %v3665_v29 }
 0x2e8   :  { %v3672_v37 = vadd.f32 %v2437_v33, %v3542_v45  ;;  %v1306_v41 = vpop.f32.mrb[65].mxu0  ;;  %1491 = vmax.xlane.f32.xlu1 %v3668_v31 }
 0x2e9   :  { %v2438_v46 = vpop.f32.mrb[66].mxu0  ;;  %v3681_v56 = vadd.f32 %v3542_v45, %v1306_v41 }
 0x2ea   :  { %v3676_v49 = vadd.f32 %v2438_v46, %v3542_v45  ;;  %v1309_v51 = vpop.f32.mrb[67].mxu0 }
 0x2eb   :  { %1501 = vmax.xlane.f32.xlu0 %v3672_v37  ;;  %v3684_v61 = vadd.f32 %v3542_v45, %v1309_v51 }
 0x2ec   :  { %1503 = vmax.xlane.f32.xlu1 %v3676_v49 }
 0x2ef   :  { %v2441_v63 = vpop.f32.mrb[68].mxu0  ;;  %1497 = vmax.xlane.f32.xlu0 %v3681_v56 }
 0x2f0   :  { %v3688_v0 = vadd.f32 %v2441_v63, %v3542_v45  ;;  %v1322_v42 = vpop.f32.mrb[69].mxu0  ;;  %1499 = vmax.xlane.f32.xlu1 %v3684_v61 }
 0x2f1   :  { %v2442_v11 = vpop.f32.mrb[70].mxu0  ;;  %v3697_v54 = vadd.f32 %v3542_v45, %v1322_v42 }
 0x2f2   :  { %v3692_v35 = vadd.f32 %v2442_v11, %v3542_v45  ;;  %v1325_v40 = vpop.f32.mrb[71].mxu0 }
 0x2f3   :  { %1509 = vmax.xlane.f32.xlu0 %v3688_v0  ;;  %v3700_v6 = vadd.f32 %v3542_v45, %v1325_v40 }
 0x2f4   :  { %1511 = vmax.xlane.f32.xlu1 %v3692_v35 }
 0x2f7   :  { %v2445_v15 = vpop.f32.mrb[72].mxu0  ;;  %1505 = vmax.xlane.f32.xlu0 %v3697_v54 }
 0x2f8   :  { %v3704_v19 = vadd.f32 %v2445_v15, %v3542_v45  ;;  %v1338_v30 = vpop.f32.mrb[73].mxu0  ;;  %1507 = vmax.xlane.f32.xlu1 %v3700_v6 }
 0x2f9   :  { %v2446_v47 = vpop.f32.mrb[74].mxu0  ;;  %v3713_v12 = vadd.f32 %v3542_v45, %v1338_v30 }
 0x2fa   :  { %v3708_v57 = vadd.f32 %v2446_v47, %v3542_v45  ;;  %v1341_v1 = vpop.f32.mrb[75].mxu0 }
 0x2fb   :  { %1517 = vmax.xlane.f32.xlu0 %v3704_v19  ;;  %v3716_v28 = vadd.f32 %v3542_v45, %v1341_v1 }
 0x2fc   :  { %1519 = vmax.xlane.f32.xlu1 %v3708_v57 }
 0x2ff   :  { %v2449_v53 = vpop.f32.mrb[76].mxu0  ;;  %1513 = vmax.xlane.f32.xlu0 %v3713_v12 }
 0x300   :  { %v3720_v3 = vadd.f32 %v2449_v53, %v3542_v45  ;;  %v1354_v14 = vpop.f32.mrb[77].mxu0  ;;  %1515 = vmax.xlane.f32.xlu1 %v3716_v28 }
 0x301   :  { %v2450_v20 = vpop.f32.mrb[78].mxu0  ;;  %v3729_v27 = vadd.f32 %v3542_v45, %v1354_v14 }
 0x302   :  { %v3724_v22 = vadd.f32 %v2450_v20, %v3542_v45  ;;  %v1357_v25 = vpop.f32.mrb[79].mxu0 }
 0x303   :  { %1525 = vmax.xlane.f32.xlu0 %v3720_v3  ;;  %v3732_v33 = vadd.f32 %v3542_v45, %v1357_v25 }
 0x304   :  { %1527 = vmax.xlane.f32.xlu1 %v3724_v22 }
 0x307   :  { %v2453_v41 = vpop.f32.mrb[80].mxu0  ;;  %1521 = vmax.xlane.f32.xlu0 %v3729_v27 }
 0x308   :  { %v3736_v46 = vadd.f32 %v2453_v41, %v3542_v45  ;;  %v1370_v51 = vpop.f32.mrb[81].mxu0  ;;  %1523 = vmax.xlane.f32.xlu1 %v3732_v33 }
 0x309   :  { %v2454_v63 = vpop.f32.mrb[82].mxu0  ;;  %v3745_v40 = vadd.f32 %v3542_v45, %v1370_v51 }
 0x30a   :  { %v3740_v42 = vadd.f32 %v2454_v63, %v3542_v45  ;;  %v1373_v11 = vpop.f32.mrb[83].mxu0 }
 0x30b   :  { %1533 = vmax.xlane.f32.xlu0 %v3736_v46  ;;  %4344 = vst [vmem:[#allocation2_spill] sm:$0xff] %v3745_v40  ;;  %v3748_v15 = vadd.f32 %v3542_v45, %v1373_v11 }
 0x30c   :  { %1535 = vmax.xlane.f32.xlu1 %v3740_v42 }
 0x30d   :  { %4345 = vst [vmem:[#allocation3_spill] sm:$0xff] %v3748_v15 }
 0x30f   :  { %v2457_v30 = vpop.f32.mrb[84].mxu0  ;;  %1529 = vmax.xlane.f32.xlu0 %v3745_v40 }
 0x310   :  { %v3752_v47 = vadd.f32 %v2457_v30, %v3542_v45  ;;  %v1386_v1 = vpop.f32.mrb[85].mxu0  ;;  %1531 = vmax.xlane.f32.xlu1 %v3748_v15 }
 0x311   :  { %v2458_v53 = vpop.f32.mrb[86].mxu0  ;;  %v3761_v25 = vadd.f32 %v3542_v45, %v1386_v1 }
 0x312   :  { %4346 = vst [vmem:[#allocation4_spill] sm:$0xff] %v3752_v47  ;;  %v3756_v14 = vadd.f32 %v2458_v53, %v3542_v45  ;;  %v1389_v20 = vpop.f32.mrb[87].mxu0 }
 0x313   :  { %1541 = vmax.xlane.f32.xlu0 %v3752_v47  ;;  %4348 = vst [vmem:[#allocation6_spill] sm:$0xff] %v3761_v25  ;;  %v3764_v41 = vadd.f32 %v3542_v45, %v1389_v20 }
 0x314   :  { %4347 = vst [vmem:[#allocation5_spill] sm:$0xff] %v3756_v14  ;;  %1543 = vmax.xlane.f32.xlu1 %v3756_v14 }
 0x315   :  { %4349 = vst [vmem:[#allocation7_spill] sm:$0xff] %v3764_v41 }
 0x317   :  { %v2461_v51 = vpop.f32.mrb[88].mxu0  ;;  %1537 = vmax.xlane.f32.xlu0 %v3761_v25 }
 0x318   :  { %v3768_v63 = vadd.f32 %v2461_v51, %v3542_v45  ;;  %v1402_v11 = vpop.f32.mrb[89].mxu0  ;;  %1539 = vmax.xlane.f32.xlu1 %v3764_v41 }
 0x319   :  { %v2462_v30 = vpop.f32.mrb[90].mxu0  ;;  %v3777_v1 = vadd.f32 %v3542_v45, %v1402_v11 }
 0x31a   :  { %4350 = vst [vmem:[#allocation8_spill] sm:$0xff] %v3768_v63  ;;  %v3772_v53 = vadd.f32 %v2462_v30, %v3542_v45  ;;  %v1405_v14 = vpop.f32.mrb[91].mxu0 }
 0x31b   :  { %1549 = vmax.xlane.f32.xlu0 %v3768_v63  ;;  %4352 = vst [vmem:[#allocation10_spill] sm:$0xff] %v3777_v1  ;;  %v3780_v20 = vadd.f32 %v3542_v45, %v1405_v14 }
 0x31c   :  { %4351 = vst [vmem:[#allocation9_spill] sm:$0xff] %v3772_v53  ;;  %1551 = vmax.xlane.f32.xlu1 %v3772_v53 }
 0x31d   :  { %4353 = vst [vmem:[#allocation11_spill] sm:$0xff] %v3780_v20 }
 0x31f   :  { %v2465_v51 = vpop.f32.mrb[92].mxu0  ;;  %1545 = vmax.xlane.f32.xlu0 %v3777_v1 }
 0x320   :  { %v3784_v41 = vadd.f32 %v2465_v51, %v3542_v45  ;;  %v1418_v25 = vpop.f32.mrb[93].mxu0  ;;  %1547 = vmax.xlane.f32.xlu1 %v3780_v20 }
 0x321   :  { %v2466_v30 = vpop.f32.mrb[94].mxu0  ;;  %v3793_v14 = vadd.f32 %v3542_v45, %v1418_v25 }
 0x322   :  { %4354 = vst [vmem:[#allocation12_spill] sm:$0xff] %v3784_v41  ;;  %v3788_v63 = vadd.f32 %v2466_v30, %v3542_v45  ;;  %v1421_v53 = vpop.f32.mrb[95].mxu0 }
 0x323   :  { %1557 = vmax.xlane.f32.xlu0 %v3784_v41  ;;  %4356 = vst [vmem:[#allocation14_spill] sm:$0xff] %v3793_v14  ;;  %v3796_v11 = vadd.f32 %v3542_v45, %v1421_v53 }
 0x324   :  { %4355 = vst [vmem:[#allocation13_spill] sm:$0xff] %v3788_v63  ;;  %1559 = vmax.xlane.f32.xlu1 %v3788_v63 }
 0x325   :  { %4357 = vst [vmem:[#allocation15_spill] sm:$0xff] %v3796_v11 }
 0x327   :  { %1553 = vmax.xlane.f32.xlu0 %v3793_v14 }
 0x328   :  { %1555 = vmax.xlane.f32.xlu1 %v3796_v11 }
 0x337   :  { %v1438_v51 = vpop.xlane.xlu1 %1437 }
 0x338   :  { %v1563_v20 = vsub.f32 %v3545_v32, %v1438_v51  ;;  %v1434_v30 = vpop.xlane.xlu0 %1433 }
 0x339   :  { %v1561_v1 = vsub.f32 %v3548_v36, %v1434_v30 }
 0x33a   :  { %v1629_v47 = vmul.f32 1.442695, %v1563_v20 }
 0x33b   :  { %v1625_v41 = vmul.f32 1.442695, %v1561_v1  ;;  %v1440_v15 = vpop.xlane.xlu1 %1439 }
 0x33c   :  { %2743 = vpow2.f32 %v1629_v47  ;;  %v1564_v25 = vsub.f32 %v3553_v43, %v1440_v15  ;;  %v1436_v63 = vpop.xlane.xlu0 %1435 }
 0x33d   :  { %v1562_v45 = vsub.f32 %v3556_v44, %v1436_v63  ;;  %2745 = vpow2.f32 %v1625_v41 }
 0x33e   :  { %v1631_v53 = vmul.f32 1.442695, %v1564_v25 }
 0x33f   :  { %v1627_v14 = vmul.f32 1.442695, %v1562_v45 }
 0x340   :  { %2747 = vpow2.f32 %v1631_v53  ;;  %v1446_v11 = vpop.xlane.xlu0 %1445 }
 0x341   :  { %v1567_v40 = vsub.f32 %v3561_v48, %v1446_v11  ;;  %v1448_v32 = vpop.xlane.xlu1 %1447  ;;  %2749 = vpow2.f32 %v1627_v14 }
 0x342   :  { %v1568_v51 = vsub.f32 %v3564_v55, %v1448_v32 }
 0x343   :  { %v1637_v36 = vmul.f32 1.442695, %v1567_v40 }
 0x344   :  { %v1639_v1 = vmul.f32 1.442695, %v1568_v51  ;;  %v1442_v20 = vpop.xlane.xlu0 %1441 }
 0x345   :  { %2751 = vpow2.f32 %v1637_v36  ;;  %v1565_v43 = vsub.f32 %v3569_v59, %v1442_v20  ;;  %v1444_v15 = vpop.xlane.xlu1 %1443 }
 0x346   :  { %v3807_v47 = vpop.eup %2743  ;;  %v1566_v44 = vsub.f32 %v3572_v60, %v1444_v15  ;;  %2753 = vpow2.f32 %v1639_v1 }
 0x347   :  { %v1633_v41 = vmul.f32 1.442695, %v1565_v43  ;;  %1757 = vadd.xlane.f32.xlu0 %v3807_v47  ;;  %v3811_v11 = vpop.eup %2745 }
 0x348   :  { %v1635_v48 = vmul.f32 1.442695, %v1566_v44  ;;  %v1454_v63 = vpop.xlane.xlu0 %1453 }
 0x349   :  { %2755 = vpow2.f32 %v1633_v41  ;;  %v1571_v55 = vsub.f32 %v3576_v62, %v1454_v63  ;;  %v1456_v40 = vpop.xlane.xlu1 %1455 }
 0x34a   :  { %v3814_v14 = vpop.eup %2747  ;;  %v1572_v59 = vsub.f32 %v3580_v4, %v1456_v40  ;;  %2757 = vpow2.f32 %v1635_v48 }
 0x34b   :  { %v1645_v30 = vmul.f32 1.442695, %v1571_v55  ;;  %1759 = vadd.xlane.f32.xlu1 %v3814_v14  ;;  %1753 = vadd.xlane.f32.xlu0 %v3811_v11  ;;  %v3820_v32 = vpop.eup %2749 }
 0x34c   :  { %v1647_v60 = vmul.f32 1.442695, %v1572_v59  ;;  %v1450_v25 = vpop.xlane.xlu0 %1449 }
 0x34d   :  { %2759 = vpow2.f32 %v1645_v30  ;;  %v1569_v45 = vsub.f32 %v3585_v5, %v1450_v25  ;;  %v1452_v53 = vpop.xlane.xlu1 %1451 }
 0x34e   :  { %v1570_v62 = vsub.f32 %v3588_v8, %v1452_v53  ;;  %2761 = vpow2.f32 %v1647_v60 }
 0x34f   :  { %v3823_v51 = vpop.eup %2751  ;;  %v1641_v36 = vmul.f32 1.442695, %v1569_v45  ;;  %1755 = vadd.xlane.f32.xlu1 %v3820_v32 }
 0x350   :  { %v1643_v4 = vmul.f32 1.442695, %v1570_v62  ;;  %1765 = vadd.xlane.f32.xlu0 %v3823_v51  ;;  %v1462_v1 = vpop.xlane.xlu0 %1461  ;;  %v3828_v5 = vpop.eup %2753 }
 0x351   :  { %2763 = vpow2.f32 %v1641_v36  ;;  %v1575_v20 = vsub.f32 %v3592_v13, %v1462_v1  ;;  %v1464_v43 = vpop.xlane.xlu1 %1463 }
 0x352   :  { %v1576_v15 = vsub.f32 %v3596_v50, %v1464_v43  ;;  %2765 = vpow2.f32 %v1643_v4 }
 0x353   :  { %v3831_v44 = vpop.eup %2755  ;;  %v1653_v8 = vmul.f32 1.442695, %v1575_v20  ;;  %1767 = vadd.xlane.f32.xlu1 %v3828_v5 }
 0x354   :  { %v1655_v41 = vmul.f32 1.442695, %v1576_v15  ;;  %1761 = vadd.xlane.f32.xlu0 %v3831_v44  ;;  %v1458_v48 = vpop.xlane.xlu0 %1457  ;;  %v3836_v13 = vpop.eup %2757 }
 0x355   :  { %2767 = vpow2.f32 %v1653_v8  ;;  %v1573_v63 = vsub.f32 %v3601_v58, %v1458_v48  ;;  %v1460_v55 = vpop.xlane.xlu1 %1459 }
 0x356   :  { %v1574_v40 = vsub.f32 %v3604_v2, %v1460_v55  ;;  %2769 = vpow2.f32 %v1655_v41 }
 0x357   :  { %v3839_v59 = vpop.eup %2759  ;;  %v1649_v50 = vmul.f32 1.442695, %v1573_v63  ;;  %1763 = vadd.xlane.f32.xlu1 %v3836_v13 }
 0x358   :  { %v1651_v30 = vmul.f32 1.442695, %v1574_v40  ;;  %1773 = vadd.xlane.f32.xlu0 %v3839_v59  ;;  %v1470_v60 = vpop.xlane.xlu0 %1469  ;;  %v3844_v58 = vpop.eup %2761 }
 0x359   :  { %2771 = vpow2.f32 %v1649_v50  ;;  %v1579_v25 = vsub.f32 %v3608_v10, %v1470_v60  ;;  %v1472_v45 = vpop.xlane.xlu1 %1471 }
 0x35a   :  { %v1580_v53 = vsub.f32 %v3612_v23, %v1472_v45  ;;  %2773 = vpow2.f32 %v1651_v30 }
 0x35b   :  { %v3847_v62 = vpop.eup %2763  ;;  %v1661_v2 = vmul.f32 1.442695, %v1579_v25  ;;  %1775 = vadd.xlane.f32.xlu1 %v3844_v58 }
 0x35c   :  { %v1663_v36 = vmul.f32 1.442695, %v1580_v53  ;;  %1769 = vadd.xlane.f32.xlu0 %v3847_v62  ;;  %v1466_v4 = vpop.xlane.xlu0 %1465  ;;  %v3852_v10 = vpop.eup %2765 }
 0x35d   :  { %2775 = vpow2.f32 %v1661_v2  ;;  %v1577_v1 = vsub.f32 %v3617_v34, %v1466_v4  ;;  %v1468_v20 = vpop.xlane.xlu1 %1467 }
 0x35e   :  { %v1578_v43 = vsub.f32 %v3620_v39, %v1468_v20  ;;  %2777 = vpow2.f32 %v1663_v36 }
 0x35f   :  { %v3855_v15 = vpop.eup %2767  ;;  %v1657_v23 = vmul.f32 1.442695, %v1577_v1  ;;  %1771 = vadd.xlane.f32.xlu1 %v3852_v10 }
 0x360   :  { %v1659_v8 = vmul.f32 1.442695, %v1578_v43  ;;  %1781 = vadd.xlane.f32.xlu0 %v3855_v15  ;;  %v1478_v41 = vpop.xlane.xlu0 %1477  ;;  %v3860_v34 = vpop.eup %2769 }
 0x361   :  { %2779 = vpow2.f32 %v1657_v23  ;;  %v1583_v48 = vsub.f32 %v3624_v52, %v1478_v41  ;;  %v1480_v63 = vpop.xlane.xlu1 %1479 }
 0x362   :  { %v1584_v55 = vsub.f32 %v3628_v7, %v1480_v63  ;;  %2781 = vpow2.f32 %v1659_v8 }
 0x363   :  { %v3863_v40 = vpop.eup %2771  ;;  %v1669_v39 = vmul.f32 1.442695, %v1583_v48  ;;  %1783 = vadd.xlane.f32.xlu1 %v3860_v34 }
 0x364   :  { %v1671_v50 = vmul.f32 1.442695, %v1584_v55  ;;  %1777 = vadd.xlane.f32.xlu0 %v3863_v40  ;;  %v1474_v30 = vpop.xlane.xlu0 %1473  ;;  %v3868_v52 = vpop.eup %2773 }
 0x365   :  { %2783 = vpow2.f32 %v1669_v39  ;;  %v1581_v60 = vsub.f32 %v3633_v18, %v1474_v30  ;;  %v1476_v25 = vpop.xlane.xlu1 %1475 }
 0x366   :  { %v1582_v45 = vsub.f32 %v3636_v24, %v1476_v25  ;;  %2785 = vpow2.f32 %v1671_v50 }
 0x367   :  { %v3871_v53 = vpop.eup %2775  ;;  %v1665_v7 = vmul.f32 1.442695, %v1581_v60  ;;  %1779 = vadd.xlane.f32.xlu1 %v3868_v52 }
 0x368   :  { %v1667_v2 = vmul.f32 1.442695, %v1582_v45  ;;  %1789 = vadd.xlane.f32.xlu0 %v3871_v53  ;;  %v1486_v36 = vpop.xlane.xlu0 %1485  ;;  %v3876_v18 = vpop.eup %2777 }
 0x369   :  { %2787 = vpow2.f32 %v1665_v7  ;;  %v1587_v4 = vsub.f32 %v3640_v38, %v1486_v36  ;;  %v1488_v1 = vpop.xlane.xlu1 %1487 }
 0x36a   :  { %v1588_v20 = vsub.f32 %v3644_v9, %v1488_v1  ;;  %2789 = vpow2.f32 %v1667_v2 }
 0x36b   :  { %v3879_v43 = vpop.eup %2779  ;;  %v1677_v24 = vmul.f32 1.442695, %v1587_v4  ;;  %1791 = vadd.xlane.f32.xlu1 %v3876_v18 }
 0x36c   :  { %v1679_v23 = vmul.f32 1.442695, %v1588_v20  ;;  %1785 = vadd.xlane.f32.xlu0 %v3879_v43  ;;  %v1482_v8 = vpop.xlane.xlu0 %1481  ;;  %v3884_v38 = vpop.eup %2781 }
 0x36d   :  { %2791 = vpow2.f32 %v1677_v24  ;;  %v1585_v41 = vsub.f32 %v3649_v16, %v1482_v8  ;;  %v1484_v48 = vpop.xlane.xlu1 %1483 }
 0x36e   :  { %v1586_v63 = vsub.f32 %v3652_v17, %v1484_v48  ;;  %2793 = vpow2.f32 %v1679_v23 }
 0x36f   :  { %v3887_v55 = vpop.eup %2783  ;;  %v1673_v9 = vmul.f32 1.442695, %v1585_v41  ;;  %1787 = vadd.xlane.f32.xlu1 %v3884_v38 }
 0x370   :  { %v1675_v39 = vmul.f32 1.442695, %v1586_v63  ;;  %1797 = vadd.xlane.f32.xlu0 %v3887_v55  ;;  %v1494_v50 = vpop.xlane.xlu0 %1493  ;;  %v3892_v16 = vpop.eup %2785 }
 0x371   :  { %2795 = vpow2.f32 %v1673_v9  ;;  %v1591_v30 = vsub.f32 %v3656_v21, %v1494_v50  ;;  %v1496_v60 = vpop.xlane.xlu1 %1495 }
 0x372   :  { %v1592_v25 = vsub.f32 %v3660_v26, %v1496_v60  ;;  %2797 = vpow2.f32 %v1675_v39 }
 0x373   :  { %v3895_v45 = vpop.eup %2787  ;;  %v1685_v17 = vmul.f32 1.442695, %v1591_v30  ;;  %1799 = vadd.xlane.f32.xlu1 %v3892_v16 }
 0x374   :  { %v1687_v7 = vmul.f32 1.442695, %v1592_v25  ;;  %1793 = vadd.xlane.f32.xlu0 %v3895_v45  ;;  %v1490_v2 = vpop.xlane.xlu0 %1489  ;;  %v3900_v21 = vpop.eup %2789 }
 0x375   :  { %2799 = vpow2.f32 %v1685_v17  ;;  %v1589_v36 = vsub.f32 %v3665_v29, %v1490_v2  ;;  %v1492_v4 = vpop.xlane.xlu1 %1491 }
 0x376   :  { %v1590_v1 = vsub.f32 %v3668_v31, %v1492_v4  ;;  %2801 = vpow2.f32 %v1687_v7 }
 0x377   :  { %v3903_v20 = vpop.eup %2791  ;;  %v1681_v26 = vmul.f32 1.442695, %v1589_v36  ;;  %1795 = vadd.xlane.f32.xlu1 %v3900_v21 }
 0x378   :  { %v1683_v24 = vmul.f32 1.442695, %v1590_v1  ;;  %1805 = vadd.xlane.f32.xlu0 %v3903_v20  ;;  %v1502_v23 = vpop.xlane.xlu0 %1501  ;;  %v3908_v29 = vpop.eup %2793 }
 0x379   :  { %2803 = vpow2.f32 %v1681_v26  ;;  %v1595_v8 = vsub.f32 %v3672_v37, %v1502_v23  ;;  %v1504_v41 = vpop.xlane.xlu1 %1503 }
 0x37a   :  { %v1596_v48 = vsub.f32 %v3676_v49, %v1504_v41  ;;  %2805 = vpow2.f32 %v1683_v24 }
 0x37b   :  { %v3911_v63 = vpop.eup %2795  ;;  %v1693_v31 = vmul.f32 1.442695, %v1595_v8  ;;  %1807 = vadd.xlane.f32.xlu1 %v3908_v29 }
 0x37c   :  { %v1695_v9 = vmul.f32 1.442695, %v1596_v48  ;;  %1801 = vadd.xlane.f32.xlu0 %v3911_v63  ;;  %v1498_v39 = vpop.xlane.xlu0 %1497  ;;  %v3916_v37 = vpop.eup %2797 }
 0x37d   :  { %2807 = vpow2.f32 %v1693_v31  ;;  %v1593_v50 = vsub.f32 %v3681_v56, %v1498_v39  ;;  %v1500_v30 = vpop.xlane.xlu1 %1499 }
 0x37e   :  { %v1594_v60 = vsub.f32 %v3684_v61, %v1500_v30  ;;  %2809 = vpow2.f32 %v1695_v9 }
 0x37f   :  { %v3919_v25 = vpop.eup %2799  ;;  %v1689_v49 = vmul.f32 1.442695, %v1593_v50  ;;  %1803 = vadd.xlane.f32.xlu1 %v3916_v37 }
 0x380   :  { %v1691_v17 = vmul.f32 1.442695, %v1594_v60  ;;  %1813 = vadd.xlane.f32.xlu0 %v3919_v25  ;;  %v1510_v7 = vpop.xlane.xlu0 %1509  ;;  %v3924_v56 = vpop.eup %2801 }
 0x381   :  { %2811 = vpow2.f32 %v1689_v49  ;;  %v1599_v2 = vsub.f32 %v3688_v0, %v1510_v7  ;;  %v1512_v36 = vpop.xlane.xlu1 %1511 }
 0x382   :  { %v1600_v4 = vsub.f32 %v3692_v35, %v1512_v36  ;;  %2813 = vpow2.f32 %v1691_v17 }
 0x383   :  { %v3927_v1 = vpop.eup %2803  ;;  %v1701_v61 = vmul.f32 1.442695, %v1599_v2  ;;  %1815 = vadd.xlane.f32.xlu1 %v3924_v56 }
 0x384   :  { %v1703_v26 = vmul.f32 1.442695, %v1600_v4  ;;  %1809 = vadd.xlane.f32.xlu0 %v3927_v1  ;;  %v1506_v24 = vpop.xlane.xlu0 %1505  ;;  %v3932_v0 = vpop.eup %2805 }
 0x385   :  { %2815 = vpow2.f32 %v1701_v61  ;;  %v1597_v23 = vsub.f32 %v3697_v54, %v1506_v24  ;;  %v1508_v8 = vpop.xlane.xlu1 %1507 }
 0x386   :  { %v1598_v41 = vsub.f32 %v3700_v6, %v1508_v8  ;;  %2817 = vpow2.f32 %v1703_v26 }
 0x387   :  { %v3935_v48 = vpop.eup %2807  ;;  %v1697_v35 = vmul.f32 1.442695, %v1597_v23  ;;  %1811 = vadd.xlane.f32.xlu1 %v3932_v0 }
 0x388   :  { %v1699_v31 = vmul.f32 1.442695, %v1598_v41  ;;  %1821 = vadd.xlane.f32.xlu0 %v3935_v48  ;;  %v1518_v9 = vpop.xlane.xlu0 %1517  ;;  %v3940_v54 = vpop.eup %2809 }
 0x389   :  { %2819 = vpow2.f32 %v1697_v35  ;;  %v1603_v39 = vsub.f32 %v3704_v19, %v1518_v9  ;;  %v1520_v50 = vpop.xlane.xlu1 %1519 }
 0x38a   :  { %v1604_v30 = vsub.f32 %v3708_v57, %v1520_v50  ;;  %2821 = vpow2.f32 %v1699_v31 }
 0x38b   :  { %v3943_v60 = vpop.eup %2811  ;;  %v1709_v6 = vmul.f32 1.442695, %v1603_v39  ;;  %1823 = vadd.xlane.f32.xlu1 %v3940_v54 }
 0x38c   :  { %v1711_v49 = vmul.f32 1.442695, %v1604_v30  ;;  %1817 = vadd.xlane.f32.xlu0 %v3943_v60  ;;  %v1514_v17 = vpop.xlane.xlu0 %1513  ;;  %v3948_v19 = vpop.eup %2813 }
 0x38d   :  { %2823 = vpow2.f32 %v1709_v6  ;;  %v1601_v7 = vsub.f32 %v3713_v12, %v1514_v17  ;;  %v1516_v2 = vpop.xlane.xlu1 %1515 }
 0x38e   :  { %v1602_v36 = vsub.f32 %v3716_v28, %v1516_v2  ;;  %2825 = vpow2.f32 %v1711_v49 }
 0x38f   :  { %v3951_v4 = vpop.eup %2815  ;;  %v1705_v57 = vmul.f32 1.442695, %v1601_v7  ;;  %1819 = vadd.xlane.f32.xlu1 %v3948_v19 }
 0x390   :  { %v1707_v61 = vmul.f32 1.442695, %v1602_v36  ;;  %1829 = vadd.xlane.f32.xlu0 %v3951_v4  ;;  %v1526_v26 = vpop.xlane.xlu0 %1525  ;;  %v3956_v12 = vpop.eup %2817 }
 0x391   :  { %2827 = vpow2.f32 %v1705_v57  ;;  %v1607_v24 = vsub.f32 %v3720_v3, %v1526_v26  ;;  %v1528_v23 = vpop.xlane.xlu1 %1527  ;;  %v4358_v26 = vld [vmem:[#allocation2_spill] sm:$0xff] }
 0x392   :  { %v1608_v8 = vsub.f32 %v3724_v22, %v1528_v23  ;;  %2829 = vpow2.f32 %v1707_v61 }
 0x393   :  { %v3959_v41 = vpop.eup %2819  ;;  %v1717_v28 = vmul.f32 1.442695, %v1607_v24  ;;  %1831 = vadd.xlane.f32.xlu1 %v3956_v12 }
 0x394   :  { %v1719_v35 = vmul.f32 1.442695, %v1608_v8  ;;  %1825 = vadd.xlane.f32.xlu0 %v3959_v41  ;;  %v1522_v31 = vpop.xlane.xlu0 %1521  ;;  %v3964_v3 = vpop.eup %2821  ;;  %v4359_v8 = vld [vmem:[#allocation3_spill] sm:$0xff] }
 0x395   :  { %2831 = vpow2.f32 %v1717_v28  ;;  %v1605_v9 = vsub.f32 %v3729_v27, %v1522_v31  ;;  %v1524_v39 = vpop.xlane.xlu1 %1523 }
 0x396   :  { %v1606_v50 = vsub.f32 %v3732_v33, %v1524_v39  ;;  %2833 = vpow2.f32 %v1719_v35  ;;  %v4360_v39 = vld [vmem:[#allocation4_spill] sm:$0xff] }
 0x397   :  { %v3967_v30 = vpop.eup %2823  ;;  %v1713_v22 = vmul.f32 1.442695, %v1605_v9  ;;  %1827 = vadd.xlane.f32.xlu1 %v3964_v3 }
 0x398   :  { %v1715_v6 = vmul.f32 1.442695, %v1606_v50  ;;  %1837 = vadd.xlane.f32.xlu0 %v3967_v30  ;;  %v1534_v49 = vpop.xlane.xlu0 %1533  ;;  %v3972_v27 = vpop.eup %2825 }
 0x399   :  { %2835 = vpow2.f32 %v1713_v22  ;;  %v1611_v17 = vsub.f32 %v3736_v46, %v1534_v49  ;;  %v1536_v7 = vpop.xlane.xlu1 %1535  ;;  %v4361_v49 = vld [vmem:[#allocation5_spill] sm:$0xff] }
 0x39a   :  { %v1612_v2 = vsub.f32 %v3740_v42, %v1536_v7  ;;  %2837 = vpow2.f32 %v1715_v6 }
 0x39b   :  { %v3975_v36 = vpop.eup %2827  ;;  %v1725_v33 = vmul.f32 1.442695, %v1611_v17  ;;  %1839 = vadd.xlane.f32.xlu1 %v3972_v27 }
 0x39c   :  { %v1727_v57 = vmul.f32 1.442695, %v1612_v2  ;;  %1833 = vadd.xlane.f32.xlu0 %v3975_v36  ;;  %v1530_v61 = vpop.xlane.xlu0 %1529  ;;  %v3980_v46 = vpop.eup %2829 }
 0x39d   :  { %2839 = vpow2.f32 %v1725_v33  ;;  %v1609_v24 = vsub.f32 %v4358_v26, %v1530_v61  ;;  %v1532_v23 = vpop.xlane.xlu1 %1531  ;;  %v4363_v61 = vld [vmem:[#allocation6_spill] sm:$0xff] }
 0x39e   :  { %v1610_v28 = vsub.f32 %v4359_v8, %v1532_v23  ;;  %2841 = vpow2.f32 %v1727_v57  ;;  %v4365_v8 = vld [vmem:[#allocation7_spill] sm:$0xff] }
 0x39f   :  { %v3983_v35 = vpop.eup %2831  ;;  %v1721_v42 = vmul.f32 1.442695, %v1609_v24  ;;  %1835 = vadd.xlane.f32.xlu1 %v3980_v46 }
 0x3a0   :  { %v1723_v31 = vmul.f32 1.442695, %v1610_v28  ;;  %1845 = vadd.xlane.f32.xlu0 %v3983_v35  ;;  %v1542_v9 = vpop.xlane.xlu0 %1541  ;;  %v3988_v6 = vpop.eup %2833 }
 0x3a1   :  { %2843 = vpow2.f32 %v1721_v42  ;;  %v1615_v50 = vsub.f32 %v4360_v39, %v1542_v9  ;;  %v1544_v22 = vpop.xlane.xlu1 %1543 }
 0x3a2   :  { %v1616_v17 = vsub.f32 %v4361_v49, %v1544_v22  ;;  %2845 = vpow2.f32 %v1723_v31 }
 0x3a3   :  { %v3991_v7 = vpop.eup %2835  ;;  %v1733_v2 = vmul.f32 1.442695, %v1615_v50  ;;  %1847 = vadd.xlane.f32.xlu1 %v3988_v6  ;;  %v4367_v50 = vld [vmem:[#allocation8_spill] sm:$0xff] }
 0x3a4   :  { %4362 = vst [vmem:[#allocation2_spill] sm:$0xff] %v3991_v7  ;;  %v1735_v33 = vmul.f32 1.442695, %v1616_v17  ;;  %1841 = vadd.xlane.f32.xlu0 %v3991_v7  ;;  %v1538_v57 = vpop.xlane.xlu0 %1537  ;;  %v3996_v23 = vpop.eup %2837 }
 0x3a5   :  { %2847 = vpow2.f32 %v1733_v2  ;;  %v1613_v26 = vsub.f32 %v4363_v61, %v1538_v57  ;;  %v1540_v24 = vpop.xlane.xlu1 %1539  ;;  %4364 = vst [vmem:[#allocation3_spill] sm:$0xff] %v3996_v23  ;;  %v4369_v2 = vld [vmem:[#allocation9_spill] sm:$0xff] }
 0x3a6   :  { %v1614_v28 = vsub.f32 %v4365_v8, %v1540_v24  ;;  %2849 = vpow2.f32 %v1735_v33  ;;  %v4371_v8 = vld [vmem:[#allocation10_spill] sm:$0xff] }
 0x3a7   :  { %v3999_v42 = vpop.eup %2839  ;;  %v1729_v9 = vmul.f32 1.442695, %v1613_v26  ;;  %1843 = vadd.xlane.f32.xlu1 %v3996_v23 }
 0x3a8   :  { %4366 = vst [vmem:[#allocation4_spill] sm:$0xff] %v3999_v42  ;;  %v1731_v39 = vmul.f32 1.442695, %v1614_v28  ;;  %1853 = vadd.xlane.f32.xlu0 %v3999_v42  ;;  %v1550_v31 = vpop.xlane.xlu0 %1549  ;;  %v4004_v17 = vpop.eup %2841 }
 0x3a9   :  { %2851 = vpow2.f32 %v1729_v9  ;;  %v1619_v22 = vsub.f32 %v4367_v50, %v1550_v31  ;;  %v1552_v49 = vpop.xlane.xlu1 %1551  ;;  %4368 = vst [vmem:[#allocation5_spill] sm:$0xff] %v4004_v17  ;;  %v4373_v50 = vld [vmem:[#allocation11_spill] sm:$0xff] }
 0x3aa   :  { %v1620_v57 = vsub.f32 %v4369_v2, %v1552_v49  ;;  %2853 = vpow2.f32 %v1731_v39 }
 0x3ab   :  { %v4007_v61 = vpop.eup %2843  ;;  %v1741_v24 = vmul.f32 1.442695, %v1619_v22  ;;  %1855 = vadd.xlane.f32.xlu1 %v4004_v17 }
 0x3ac   :  { %4370 = vst [vmem:[#allocation6_spill] sm:$0xff] %v4007_v61  ;;  %v1743_v26 = vmul.f32 1.442695, %v1620_v57  ;;  %1849 = vadd.xlane.f32.xlu0 %v4007_v61  ;;  %v1546_v33 = vpop.xlane.xlu0 %1545  ;;  %v4012_v31 = vpop.eup %2845 }
 0x3ad   :  { %2855 = vpow2.f32 %v1741_v24  ;;  %v1617_v28 = vsub.f32 %v4371_v8, %v1546_v33  ;;  %v1548_v9 = vpop.xlane.xlu1 %1547  ;;  %4372 = vst [vmem:[#allocation7_spill] sm:$0xff] %v4012_v31  ;;  %v4376_v8 = vld [vmem:[#allocation12_spill] sm:$0xff] }
 0x3ae   :  { %v1618_v42 = vsub.f32 %v4373_v50, %v1548_v9  ;;  %2857 = vpow2.f32 %v1743_v26  ;;  %v4377_v9 = vld [vmem:[#allocation14_spill] sm:$0xff] }
 0x3af   :  { %v4015_v23 = vpop.eup %2847  ;;  %v1737_v49 = vmul.f32 1.442695, %v1617_v28  ;;  %1851 = vadd.xlane.f32.xlu1 %v4012_v31  ;;  %v4379_v31 = vld [vmem:[#allocation15_spill] sm:$0xff] }
 0x3b0   :  { %4374 = vst [vmem:[#allocation8_spill] sm:$0xff] %v4015_v23  ;;  %v1739_v22 = vmul.f32 1.442695, %v1618_v42  ;;  %1861 = vadd.xlane.f32.xlu0 %v4015_v23  ;;  %v1558_v39 = vpop.xlane.xlu0 %1557  ;;  %v4019_v57 = vpop.eup %2849  ;;  %v4378_v23 = vld [vmem:[#allocation13_spill] sm:$0xff] }
 0x3b1   :  { %2859 = vpow2.f32 %v1737_v49  ;;  %v1560_v2 = vpop.xlane.xlu1 %1559  ;;  %v1623_v28 = vsub.f32 %v4376_v8, %v1558_v39 }
 0x3b2   :  { %2861 = vpow2.f32 %v1739_v22  ;;  %v1624_v49 = vsub.f32 %v4378_v23, %v1560_v2 }
 0x3b3   :  { %v4021_v24 = vpop.eup %2851  ;;  %1863 = vadd.xlane.f32.xlu1 %v4019_v57 }
 0x3b4   :  { %4375 = vst [vmem:[#allocation9_spill] sm:$0xff] %v4021_v24  ;;  %1857 = vadd.xlane.f32.xlu0 %v4021_v24  ;;  %v1554_v33 = vpop.xlane.xlu0 %1553  ;;  %v4027_v50 = vpop.eup %2853  ;;  %v1749_v24 = vmul.f32 1.442695, %v1623_v28 }
 0x3b5   :  { %v1621_v26 = vsub.f32 %v4377_v9, %v1554_v33  ;;  %v1556_v42 = vpop.xlane.xlu1 %1555  ;;  %v1751_v33 = vmul.f32 1.442695, %v1624_v49 }
 0x3b6   :  { %v1622_v61 = vsub.f32 %v4379_v31, %v1556_v42 }
 0x3b7   :  { %v4031_v17 = vpop.eup %2855  ;;  %v1745_v7 = vmul.f32 1.442695, %v1621_v26  ;;  %1859 = vadd.xlane.f32.xlu1 %v4027_v50 }
 0x3b8   :  { %v1747_v22 = vmul.f32 1.442695, %v1622_v61  ;;  %1869 = vadd.xlane.f32.xlu0 %v4031_v17  ;;  %v4035_v39 = vpop.eup %2857 }
 0x3b9   :  { %2863 = vpow2.f32 %v1745_v7 }
 0x3ba   :  { %2865 = vpow2.f32 %v1747_v22 }
 0x3bb   :  { %v4037_v8 = vpop.eup %2859  ;;  %1871 = vadd.xlane.f32.xlu1 %v4035_v39  ;;  %2867 = vpow2.f32 %v1749_v24 }
 0x3bc   :  { %1865 = vadd.xlane.f32.xlu0 %v4037_v8  ;;  %v4041_v23 = vpop.eup %2861  ;;  %2869 = vpow2.f32 %v1751_v33 }
 0x3bf   :  { %1867 = vadd.xlane.f32.xlu1 %v4041_v23 }
 0x3c3   :  { %v4044_v61 = vpop.eup %2863 }
 0x3c4   :  { %v4046_v31 = vpop.eup %2865  ;;  %1873 = vadd.xlane.f32.xlu0 %v4044_v61 }
 0x3c5   :  { %4380 = vst [vmem:[#allocation10_spill] sm:$0xff] %v4046_v31  ;;  %1875 = vadd.xlane.f32.xlu1 %v4046_v31  ;;  %v4050_v7 = vpop.eup %2867 }
 0x3c6   :  { %v4052_v2 = vpop.eup %2869 }
 0x3c7   :  { %4381 = vst [vmem:[#allocation11_spill] sm:$0xff] %v4052_v2 }
 0x3c8   :  { %1877 = vadd.xlane.f32.xlu0 %v4050_v7 }
 0x3c9   :  { %1879 = vadd.xlane.f32.xlu1 %v4052_v2 }
 0x3d4   :  { %v1758_v24 = vpop.xlane.xlu0 %1757 }
 0x3d5   :  { %2871 = vrcp.f32 %v1758_v24 }
 0x3d8   :  { %v1760_v28 = vpop.xlane.xlu1 %1759  ;;  %v1754_v9 = vpop.xlane.xlu0 %1753 }
 0x3d9   :  { %2873 = vrcp.f32 %v1760_v28 }
 0x3da   :  { %2875 = vrcp.f32 %v1754_v9 }
 0x3dc   :  { %v1756_v26 = vpop.xlane.xlu1 %1755 }
 0x3dd   :  { %2877 = vrcp.f32 %v1756_v26  ;;  %v1766_v42 = vpop.xlane.xlu0 %1765 }
 0x3de   :  { %2879 = vrcp.f32 %v1766_v42 }
 0x3df   :  { %v2872_v49 = vpop.eup %2871 }
 0x3e0   :  { %v1886_v22 = vmul.f32 %v2872_v49, %v3807_v47  ;;  %v1768_v33 = vpop.xlane.xlu1 %1767 }
 0x3e1   :  { %2881 = vrcp.f32 %v1768_v33  ;;  %v1762_v31 = vpop.xlane.xlu0 %1761 }
 0x3e2   :  { %2011 = vst [vmem:[%s4319_s7 + $0x10] sm:$0xff] %v1886_v22  ;;  %2883 = vrcp.f32 %v1762_v31 }
 0x3e3   :  { %v2874_v24 = vpop.eup %2873 }
 0x3e4   :  { %v2876_v2 = vpop.eup %2875  ;;  %v1888_v28 = vmul.f32 %v2874_v24, %v3814_v14  ;;  %v1764_v9 = vpop.xlane.xlu1 %1763 }
 0x3e5   :  { %v1882_v26 = vmul.f32 %v2876_v2, %v3811_v11  ;;  %2885 = vrcp.f32 %v1764_v9  ;;  %v1774_v42 = vpop.xlane.xlu0 %1773 }
 0x3e6   :  { %2012 = vst [vmem:[%s4319_s7 + $0x18] sm:$0xff] %v1888_v28  ;;  %2887 = vrcp.f32 %v1774_v42 }
 0x3e7   :  { %v2878_v47 = vpop.eup %2877  ;;  %2009 = vst [vmem:[%s4319_s7] sm:$0xff] %v1882_v26 }
 0x3e8   :  { %v2880_v31 = vpop.eup %2879  ;;  %v1884_v49 = vmul.f32 %v2878_v47, %v3820_v32  ;;  %v1776_v22 = vpop.xlane.xlu1 %1775 }
 0x3e9   :  { %v1894_v14 = vmul.f32 %v2880_v31, %v3823_v51  ;;  %2889 = vrcp.f32 %v1776_v22  ;;  %v1770_v11 = vpop.xlane.xlu0 %1769 }
 0x3ea   :  { %2010 = vst [vmem:[%s4319_s7 + $0x8] sm:$0xff] %v1884_v49  ;;  %2891 = vrcp.f32 %v1770_v11 }
 0x3eb   :  { %v2882_v2 = vpop.eup %2881  ;;  %2015 = vst [vmem:[%s4319_s7 + $0x30] sm:$0xff] %v1894_v14 }
 0x3ec   :  { %v2884_v33 = vpop.eup %2883  ;;  %v1896_v24 = vmul.f32 %v2882_v2, %v3828_v5  ;;  %v1772_v28 = vpop.xlane.xlu1 %1771 }
 0x3ed   :  { %v1890_v32 = vmul.f32 %v2884_v33, %v3831_v44  ;;  %2893 = vrcp.f32 %v1772_v28  ;;  %v1782_v51 = vpop.xlane.xlu0 %1781 }
 0x3ee   :  { %2016 = vst [vmem:[%s4319_s7 + $0x38] sm:$0xff] %v1896_v24  ;;  %2895 = vrcp.f32 %v1782_v51 }
 0x3ef   :  { %v2886_v9 = vpop.eup %2885  ;;  %2013 = vst [vmem:[%s4319_s7 + $0x20] sm:$0xff] %v1890_v32 }
 0x3f0   :  { %v2888_v26 = vpop.eup %2887  ;;  %v1892_v42 = vmul.f32 %v2886_v9, %v3836_v13  ;;  %v1784_v47 = vpop.xlane.xlu1 %1783 }
 0x3f1   :  { %v1902_v5 = vmul.f32 %v2888_v26, %v3839_v59  ;;  %2897 = vrcp.f32 %v1784_v47  ;;  %v1778_v44 = vpop.xlane.xlu0 %1777 }
 0x3f2   :  { %2014 = vst [vmem:[%s4319_s7 + $0x28] sm:$0xff] %v1892_v42  ;;  %2899 = vrcp.f32 %v1778_v44 }
 0x3f3   :  { %v2890_v31 = vpop.eup %2889  ;;  %2019 = vst [vmem:[%s4319_s7 + $0x50] sm:$0xff] %v1902_v5 }
 0x3f4   :  { %v2892_v49 = vpop.eup %2891  ;;  %v1904_v22 = vmul.f32 %v2890_v31, %v3844_v58  ;;  %v1780_v14 = vpop.xlane.xlu1 %1779 }
 0x3f5   :  { %v1898_v13 = vmul.f32 %v2892_v49, %v3847_v62  ;;  %2901 = vrcp.f32 %v1780_v14  ;;  %v1790_v59 = vpop.xlane.xlu0 %1789 }
 0x3f6   :  { %2020 = vst [vmem:[%s4319_s7 + $0x58] sm:$0xff] %v1904_v22  ;;  %2903 = vrcp.f32 %v1790_v59 }
 0x3f7   :  { %v2894_v11 = vpop.eup %2893  ;;  %2017 = vst [vmem:[%s4319_s7 + $0x40] sm:$0xff] %v1898_v13 }
 0x3f8   :  { %v2896_v2 = vpop.eup %2895  ;;  %v1900_v33 = vmul.f32 %v2894_v11, %v3852_v10  ;;  %v1792_v24 = vpop.xlane.xlu1 %1791 }
 0x3f9   :  { %v1910_v58 = vmul.f32 %v2896_v2, %v3855_v15  ;;  %2905 = vrcp.f32 %v1792_v24  ;;  %v1786_v62 = vpop.xlane.xlu0 %1785 }
 0x3fa   :  { %2018 = vst [vmem:[%s4319_s7 + $0x48] sm:$0xff] %v1900_v33  ;;  %2907 = vrcp.f32 %v1786_v62 }
 0x3fb   :  { %v2898_v28 = vpop.eup %2897  ;;  %2023 = vst [vmem:[%s4319_s7 + $0x70] sm:$0xff] %v1910_v58 }
 0x3fc   :  { %v2900_v32 = vpop.eup %2899  ;;  %v1912_v51 = vmul.f32 %v2898_v28, %v3860_v34  ;;  %v1788_v9 = vpop.xlane.xlu1 %1787 }
 0x3fd   :  { %v1906_v10 = vmul.f32 %v2900_v32, %v3863_v40  ;;  %2909 = vrcp.f32 %v1788_v9  ;;  %v1798_v15 = vpop.xlane.xlu0 %1797 }
 0x3fe   :  { %2024 = vst [vmem:[%s4319_s7 + $0x78] sm:$0xff] %v1912_v51  ;;  %2911 = vrcp.f32 %v1798_v15 }
 0x3ff   :  { %v2902_v26 = vpop.eup %2901  ;;  %2021 = vst [vmem:[%s4319_s7 + $0x60] sm:$0xff] %v1906_v10 }
 0x400   :  { %v2904_v42 = vpop.eup %2903  ;;  %v1908_v47 = vmul.f32 %v2902_v26, %v3868_v52  ;;  %v1800_v5 = vpop.xlane.xlu1 %1799 }
 0x401   :  { %v1918_v34 = vmul.f32 %v2904_v42, %v3871_v53  ;;  %2913 = vrcp.f32 %v1800_v5  ;;  %v1794_v40 = vpop.xlane.xlu0 %1793 }
 0x402   :  { %2022 = vst [vmem:[%s4319_s7 + $0x68] sm:$0xff] %v1908_v47  ;;  %2915 = vrcp.f32 %v1794_v40 }
 0x403   :  { %v2906_v44 = vpop.eup %2905  ;;  %2027 = vst [vmem:[%s4319_s7 + $0x90] sm:$0xff] %v1918_v34 }
 0x404   :  { %v2908_v31 = vpop.eup %2907  ;;  %v1920_v49 = vmul.f32 %v2906_v44, %v3876_v18  ;;  %v1796_v22 = vpop.xlane.xlu1 %1795 }
 0x405   :  { %v1914_v52 = vmul.f32 %v2908_v31, %v3879_v43  ;;  %2917 = vrcp.f32 %v1796_v22  ;;  %v1806_v53 = vpop.xlane.xlu0 %1805 }
 0x406   :  { %2028 = vst [vmem:[%s4319_s7 + $0x98] sm:$0xff] %v1920_v49  ;;  %2919 = vrcp.f32 %v1806_v53 }
 0x407   :  { %v2910_v14 = vpop.eup %2909  ;;  %2025 = vst [vmem:[%s4319_s7 + $0x80] sm:$0xff] %v1914_v52 }
 0x408   :  { %v2912_v13 = vpop.eup %2911  ;;  %v1916_v59 = vmul.f32 %v2910_v14, %v3884_v38  ;;  %v1808_v11 = vpop.xlane.xlu1 %1807 }
 0x409   :  { %v1926_v18 = vmul.f32 %v2912_v13, %v3887_v55  ;;  %2921 = vrcp.f32 %v1808_v11  ;;  %v1802_v43 = vpop.xlane.xlu0 %1801 }
 0x40a   :  { %2026 = vst [vmem:[%s4319_s7 + $0x88] sm:$0xff] %v1916_v59  ;;  %2923 = vrcp.f32 %v1802_v43 }
 0x40b   :  { %v2914_v2 = vpop.eup %2913  ;;  %2031 = vst [vmem:[%s4319_s7 + $0xb0] sm:$0xff] %v1926_v18 }
 0x40c   :  { %v2916_v33 = vpop.eup %2915  ;;  %v1928_v24 = vmul.f32 %v2914_v2, %v3892_v16  ;;  %v1804_v58 = vpop.xlane.xlu1 %1803 }
 0x40d   :  { %v1922_v38 = vmul.f32 %v2916_v33, %v3895_v45  ;;  %2925 = vrcp.f32 %v1804_v58  ;;  %v1814_v55 = vpop.xlane.xlu0 %1813 }
 0x40e   :  { %2032 = vst [vmem:[%s4319_s7 + $0xb8] sm:$0xff] %v1928_v24  ;;  %2927 = vrcp.f32 %v1814_v55 }
 0x40f   :  { %v2918_v62 = vpop.eup %2917  ;;  %2029 = vst [vmem:[%s4319_s7 + $0xa0] sm:$0xff] %v1922_v38 }
 0x410   :  { %v2920_v28 = vpop.eup %2919  ;;  %v1924_v32 = vmul.f32 %v2918_v62, %v3900_v21  ;;  %v1816_v51 = vpop.xlane.xlu1 %1815 }
 0x411   :  { %v1934_v16 = vmul.f32 %v2920_v28, %v3903_v20  ;;  %2929 = vrcp.f32 %v1816_v51  ;;  %v1810_v45 = vpop.xlane.xlu0 %1809 }
 0x412   :  { %2030 = vst [vmem:[%s4319_s7 + $0xa8] sm:$0xff] %v1924_v32  ;;  %2931 = vrcp.f32 %v1810_v45 }
 0x413   :  { %v2922_v9 = vpop.eup %2921  ;;  %2035 = vst [vmem:[%s4319_s7 + $0xd0] sm:$0xff] %v1934_v16 }
 0x414   :  { %v2924_v10 = vpop.eup %2923  ;;  %v1936_v15 = vmul.f32 %v2922_v9, %v3908_v29  ;;  %v1812_v26 = vpop.xlane.xlu1 %1811 }
 0x415   :  { %v1930_v21 = vmul.f32 %v2924_v10, %v3911_v63  ;;  %2933 = vrcp.f32 %v1812_v26  ;;  %v1822_v20 = vpop.xlane.xlu0 %1821 }
 0x416   :  { %2036 = vst [vmem:[%s4319_s7 + $0xd8] sm:$0xff] %v1936_v15  ;;  %2935 = vrcp.f32 %v1822_v20 }
 0x417   :  { %v2926_v42 = vpop.eup %2925  ;;  %2033 = vst [vmem:[%s4319_s7 + $0xc0] sm:$0xff] %v1930_v21 }
 0x418   :  { %v2928_v47 = vpop.eup %2927  ;;  %v1932_v5 = vmul.f32 %v2926_v42, %v3916_v37  ;;  %v1824_v34 = vpop.xlane.xlu1 %1823 }
 0x419   :  { %v1942_v29 = vmul.f32 %v2928_v47, %v3919_v25  ;;  %2937 = vrcp.f32 %v1824_v34  ;;  %v1818_v63 = vpop.xlane.xlu0 %1817 }
 0x41a   :  { %2034 = vst [vmem:[%s4319_s7 + $0xc8] sm:$0xff] %v1932_v5  ;;  %2939 = vrcp.f32 %v1818_v63 }
 0x41b   :  { %v2930_v40 = vpop.eup %2929  ;;  %2039 = vst [vmem:[%s4319_s7 + $0xf0] sm:$0xff] %v1942_v29 }
 0x41c   :  { %v2932_v44 = vpop.eup %2931  ;;  %v1944_v31 = vmul.f32 %v2930_v40, %v3924_v56  ;;  %v1820_v49 = vpop.xlane.xlu1 %1819 }
 0x41d   :  { %v1938_v37 = vmul.f32 %v2932_v44, %v3927_v1  ;;  %2941 = vrcp.f32 %v1820_v49  ;;  %v1830_v25 = vpop.xlane.xlu0 %1829 }
 0x41e   :  { %2040 = vst [vmem:[%s4319_s7 + $0xf8] sm:$0xff] %v1944_v31  ;;  %2943 = vrcp.f32 %v1830_v25  ;;  %v4383_v31 = vld [vmem:[#allocation3_spill] sm:$0xff] }
 0x41f   :  { %v2934_v22 = vpop.eup %2933  ;;  %2037 = vst [vmem:[%s4319_s7 + $0xe0] sm:$0xff] %v1938_v37 }
 0x420   :  { %v2936_v52 = vpop.eup %2935  ;;  %v1940_v53 = vmul.f32 %v2934_v22, %v3932_v0  ;;  %v1832_v14 = vpop.xlane.xlu1 %1831 }
 0x421   :  { %v1950_v56 = vmul.f32 %v2936_v52, %v3935_v48  ;;  %2945 = vrcp.f32 %v1832_v14  ;;  %v1826_v1 = vpop.xlane.xlu0 %1825  ;;  %v4385_v14 = vld [vmem:[#allocation5_spill] sm:$0xff] }
 0x422   :  { %2038 = vst [vmem:[%s4319_s7 + $0xe8] sm:$0xff] %v1940_v53  ;;  %2947 = vrcp.f32 %v1826_v1 }
 0x423   :  { %v2938_v13 = vpop.eup %2937  ;;  %2043 = vst [vmem:[%s4319_s7 + $0x110] sm:$0xff] %v1950_v56 }
 0x424   :  { %v2940_v59 = vpop.eup %2939  ;;  %v1952_v11 = vmul.f32 %v2938_v13, %v3940_v54  ;;  %v1828_v18 = vpop.xlane.xlu1 %1827  ;;  %v4386_v13 = vld [vmem:[#allocation6_spill] sm:$0xff] }
 0x425   :  { %v1946_v0 = vmul.f32 %v2940_v59, %v3943_v60  ;;  %2949 = vrcp.f32 %v1828_v18  ;;  %v1838_v48 = vpop.xlane.xlu0 %1837 }
 0x426   :  { %2044 = vst [vmem:[%s4319_s7 + $0x118] sm:$0xff] %v1952_v11  ;;  %2951 = vrcp.f32 %v1838_v48  ;;  %v4387_v48 = vld [vmem:[#allocation7_spill] sm:$0xff] }
 0x427   :  { %v2942_v43 = vpop.eup %2941  ;;  %2041 = vst [vmem:[%s4319_s7 + $0x100] sm:$0xff] %v1946_v0 }
 0x428   :  { %v2944_v2 = vpop.eup %2943  ;;  %v1948_v33 = vmul.f32 %v2942_v43, %v3948_v19  ;;  %v1840_v24 = vpop.xlane.xlu1 %1839 }
 0x429   :  { %v1958_v54 = vmul.f32 %v2944_v2, %v3951_v4  ;;  %2953 = vrcp.f32 %v1840_v24  ;;  %v1834_v60 = vpop.xlane.xlu0 %1833 }
 0x42a   :  { %2042 = vst [vmem:[%s4319_s7 + $0x108] sm:$0xff] %v1948_v33  ;;  %2955 = vrcp.f32 %v1834_v60  ;;  %v4388_v33 = vld [vmem:[#allocation8_spill] sm:$0xff] }
 0x42b   :  { %v2946_v58 = vpop.eup %2945  ;;  %2047 = vst [vmem:[%s4319_s7 + $0x130] sm:$0xff] %v1958_v54 }
 0x42c   :  { %v2948_v38 = vpop.eup %2947  ;;  %v1960_v55 = vmul.f32 %v2946_v58, %v3956_v12  ;;  %v1836_v62 = vpop.xlane.xlu1 %1835 }
 0x42d   :  { %v1954_v19 = vmul.f32 %v2948_v38, %v3959_v41  ;;  %2957 = vrcp.f32 %v1836_v62  ;;  %v1846_v4 = vpop.xlane.xlu0 %1845  ;;  %v4389_v62 = vld [vmem:[#allocation9_spill] sm:$0xff] }
 0x42e   :  { %2048 = vst [vmem:[%s4319_s7 + $0x138] sm:$0xff] %v1960_v55  ;;  %2959 = vrcp.f32 %v1846_v4 }
 0x42f   :  { %v2950_v28 = vpop.eup %2949  ;;  %2045 = vst [vmem:[%s4319_s7 + $0x120] sm:$0xff] %v1954_v19 }
 0x430   :  { %v2952_v32 = vpop.eup %2951  ;;  %v1956_v51 = vmul.f32 %v2950_v28, %v3964_v3  ;;  %v1848_v16 = vpop.xlane.xlu1 %1847 }
 0x431   :  { %v1966_v12 = vmul.f32 %v2952_v32, %v3967_v30  ;;  %2961 = vrcp.f32 %v1848_v16  ;;  %v1842_v41 = vpop.xlane.xlu0 %1841 }
 0x432   :  { %2046 = vst [vmem:[%s4319_s7 + $0x128] sm:$0xff] %v1956_v51  ;;  %2963 = vrcp.f32 %v1842_v41 }
 0x433   :  { %v2954_v45 = vpop.eup %2953  ;;  %2051 = vst [vmem:[%s4319_s7 + $0x150] sm:$0xff] %v1966_v12 }
 0x434   :  { %v2956_v9 = vpop.eup %2955  ;;  %v1968_v10 = vmul.f32 %v2954_v45, %v3972_v27  ;;  %v1844_v15 = vpop.xlane.xlu1 %1843 }
 0x435   :  { %v1962_v3 = vmul.f32 %v2956_v9, %v3975_v36  ;;  %2965 = vrcp.f32 %v1844_v15  ;;  %v1854_v30 = vpop.xlane.xlu0 %1853 }
 0x436   :  { %2052 = vst [vmem:[%s4319_s7 + $0x158] sm:$0xff] %v1968_v10  ;;  %2967 = vrcp.f32 %v1854_v30  ;;  %v4390_v30 = vld [vmem:[#allocation10_spill] sm:$0xff] }
 0x437   :  { %v2958_v26 = vpop.eup %2957  ;;  %2049 = vst [vmem:[%s4319_s7 + $0x140] sm:$0xff] %v1962_v3 }
 0x438   :  { %v2960_v21 = vpop.eup %2959  ;;  %v1964_v20 = vmul.f32 %v2958_v26, %v3980_v46  ;;  %v1856_v42 = vpop.xlane.xlu1 %1855  ;;  %v4382_v46 = vld [vmem:[#allocation2_spill] sm:$0xff] }
 0x439   :  { %v1974_v27 = vmul.f32 %v2960_v21, %v3983_v35  ;;  %2969 = vrcp.f32 %v1856_v42  ;;  %v1850_v36 = vpop.xlane.xlu0 %1849  ;;  %v4391_v42 = vld [vmem:[#allocation11_spill] sm:$0xff] }
 0x43a   :  { %2050 = vst [vmem:[%s4319_s7 + $0x148] sm:$0xff] %v1964_v20  ;;  %2971 = vrcp.f32 %v1850_v36 }
 0x43b   :  { %v2962_v47 = vpop.eup %2961  ;;  %2055 = vst [vmem:[%s4319_s7 + $0x170] sm:$0xff] %v1974_v27 }
 0x43c   :  { %v2964_v5 = vpop.eup %2963  ;;  %v1976_v34 = vmul.f32 %v2962_v47, %v3988_v6  ;;  %v1852_v29 = vpop.xlane.xlu1 %1851  ;;  %v4384_v6 = vld [vmem:[#allocation4_spill] sm:$0xff] }
 0x43d   :  { %v1970_v63 = vmul.f32 %v2964_v5, %v4382_v46  ;;  %2973 = vrcp.f32 %v1852_v29  ;;  %v1862_v35 = vpop.xlane.xlu0 %1861 }
 0x43e   :  { %2056 = vst [vmem:[%s4319_s7 + $0x178] sm:$0xff] %v1976_v34  ;;  %2975 = vrcp.f32 %v1862_v35 }
 0x43f   :  { %v2966_v40 = vpop.eup %2965  ;;  %2053 = vst [vmem:[%s4319_s7 + $0x160] sm:$0xff] %v1970_v63 }
 0x440   :  { %v2968_v44 = vpop.eup %2967  ;;  %v1972_v49 = vmul.f32 %v2966_v40, %v4383_v31  ;;  %v1864_v37 = vpop.xlane.xlu1 %1863 }
 0x441   :  { %v1982_v25 = vmul.f32 %v2968_v44, %v4384_v6  ;;  %2977 = vrcp.f32 %v1864_v37  ;;  %v1858_v22 = vpop.xlane.xlu0 %1857 }
 0x442   :  { %2054 = vst [vmem:[%s4319_s7 + $0x168] sm:$0xff] %v1972_v49  ;;  %2979 = vrcp.f32 %v1858_v22 }
 0x443   :  { %v2970_v52 = vpop.eup %2969  ;;  %2059 = vst [vmem:[%s4319_s7 + $0x190] sm:$0xff] %v1982_v25 }
 0x444   :  { %v2972_v53 = vpop.eup %2971  ;;  %v1984_v56 = vmul.f32 %v2970_v52, %v4385_v14  ;;  %v1860_v1 = vpop.xlane.xlu1 %1859 }
 0x445   :  { %v1978_v59 = vmul.f32 %v2972_v53, %v4386_v13  ;;  %2981 = vrcp.f32 %v1860_v1  ;;  %v1870_v11 = vpop.xlane.xlu0 %1869 }
 0x446   :  { %2060 = vst [vmem:[%s4319_s7 + $0x198] sm:$0xff] %v1984_v56  ;;  %2983 = vrcp.f32 %v1870_v11 }
 0x447   :  { %v2974_v18 = vpop.eup %2973  ;;  %2057 = vst [vmem:[%s4319_s7 + $0x180] sm:$0xff] %v1978_v59 }
 0x448   :  { %v2976_v0 = vpop.eup %2975  ;;  %v1980_v43 = vmul.f32 %v2974_v18, %v4387_v48  ;;  %v1872_v2 = vpop.xlane.xlu1 %1871 }
 0x449   :  { %v1990_v24 = vmul.f32 %v2976_v0, %v4388_v33  ;;  %2985 = vrcp.f32 %v1872_v2  ;;  %v1866_v54 = vpop.xlane.xlu0 %1865 }
 0x44a   :  { %2058 = vst [vmem:[%s4319_s7 + $0x188] sm:$0xff] %v1980_v43  ;;  %2987 = vrcp.f32 %v1866_v54 }
 0x44b   :  { %v2978_v60 = vpop.eup %2977  ;;  %2063 = vst [vmem:[%s4319_s7 + $0x1b0] sm:$0xff] %v1990_v24 }
 0x44c   :  { %v2980_v58 = vpop.eup %2979  ;;  %v1992_v38 = vmul.f32 %v2978_v60, %v4019_v57  ;;  %v1868_v55 = vpop.xlane.xlu1 %1867 }
 0x44d   :  { %v1986_v19 = vmul.f32 %v2980_v58, %v4389_v62  ;;  %2989 = vrcp.f32 %v1868_v55 }
 0x44e   :  { %2064 = vst [vmem:[%s4319_s7 + $0x1b8] sm:$0xff] %v1992_v38 }
 0x44f   :  { %v2982_v4 = vpop.eup %2981  ;;  %2061 = vst [vmem:[%s4319_s7 + $0x1a0] sm:$0xff] %v1986_v19 }
 0x450   :  { %v2984_v28 = vpop.eup %2983  ;;  %v1988_v32 = vmul.f32 %v2982_v4, %v4027_v50 }
 0x451   :  { %v1998_v51 = vmul.f32 %v2984_v28, %v4031_v17  ;;  %v1874_v16 = vpop.xlane.xlu0 %1873 }
 0x452   :  { %2062 = vst [vmem:[%s4319_s7 + $0x1a8] sm:$0xff] %v1988_v32  ;;  %2991 = vrcp.f32 %v1874_v16  ;;  %v1876_v57 = vpop.xlane.xlu1 %1875 }
 0x453   :  { %v2986_v12 = vpop.eup %2985  ;;  %2067 = vst [vmem:[%s4319_s7 + $0x1d0] sm:$0xff] %v1998_v51  ;;  %2993 = vrcp.f32 %v1876_v57 }
 0x454   :  { %v2988_v41 = vpop.eup %2987  ;;  %v2000_v45 = vmul.f32 %v2986_v12, %v4035_v39 }
 0x455   :  { %v1994_v50 = vmul.f32 %v2988_v41, %v4037_v8  ;;  %v1878_v9 = vpop.xlane.xlu0 %1877 }
 0x456   :  { %2068 = vst [vmem:[%s4319_s7 + $0x1d8] sm:$0xff] %v2000_v45  ;;  %2995 = vrcp.f32 %v1878_v9  ;;  %v1880_v17 = vpop.xlane.xlu1 %1879 }
 0x457   :  { %v2990_v10 = vpop.eup %2989  ;;  %2065 = vst [vmem:[%s4319_s7 + $0x1c0] sm:$0xff] %v1994_v50  ;;  %2997 = vrcp.f32 %v1880_v17 }
 0x458   :  { %v1996_v15 = vmul.f32 %v2990_v10, %v4041_v23 }
 0x45a   :  { %2066 = vst [vmem:[%s4319_s7 + $0x1c8] sm:$0xff] %v1996_v15 }
 0x45c   :  { %v2992_v39 = vpop.eup %2991 }
 0x45d   :  { %v2994_v8 = vpop.eup %2993  ;;  %v2002_v3 = vmul.f32 %v2992_v39, %v4044_v61 }
 0x45e   :  { %v2004_v26 = vmul.f32 %v2994_v8, %v4390_v30 }
 0x45f   :  { %2069 = vst [vmem:[%s4319_s7 + $0x1e0] sm:$0xff] %v2002_v3 }
 0x460   :  { %v2996_v21 = vpop.eup %2995  ;;  %2070 = vst [vmem:[%s4319_s7 + $0x1e8] sm:$0xff] %v2004_v26 }
 0x461   :  { %v2998_v23 = vpop.eup %2997  ;;  %v2006_v20 = vmul.f32 %v2996_v21, %v4050_v7 }
 0x462   :  { %v2008_v27 = vmul.f32 %v2998_v23, %v4391_v42 }
 0x463   :  { %2071 = vst [vmem:[%s4319_s7 + $0x1f0] sm:$0xff] %v2006_v20 }
 0x464   :  { %2072 = vst [vmem:[%s4319_s7 + $0x1f8] sm:$0xff] %v2008_v27 }

</bundles_post_ra>
